<compile_context>
chip_gen: v6e
topology: v6e:2x2x1
jax: 0.10.0
libtpu: 0.0.40
codegen_flags: <defaults>
</compile_context>

<pallas_src>
import functools

import jax
import jax.numpy as jnp
import numpy as np
from jax.experimental import pallas as pl
from jax.experimental.pallas import tpu as pltpu


# ------------------------------ Fused CBAM kernel -----------------------------
def _cbam_kernel(x_ref, w1t_ref, b1r_ref, w2_ref, b2c_ref, cw_ref, bnb_ref,
                 out_ref, ext_ref, band_ref, *, H, W, K, EXT):
    HW = H * W
    pad = K // 2
    HWB = HW + 2 * pad

    xv = x_ref[0]                                        # (C, HW) f32, lane-dense

    # --------------- ChannelGate: pools + tiny MLP (VPU/XLU only) -------------
    avg = jnp.mean(xv, axis=1, keepdims=True)            # (C, 1)  AdaptiveAvgPool2d(1)
    mx = jnp.max(xv, axis=1, keepdims=True)              # (C, 1)  AdaptiveMaxPool2d(1)

    w1t = w1t_ref[...]                                   # (C, Ch) == w1.T
    b1r = b1r_ref[...]                                   # (1, Ch)
    w2 = w2_ref[...]                                     # (C, Ch)
    b2c = b2c_ref[...]                                   # (C, 1)

    # mlp(p) = w2 @ relu(w1 @ p + b1) + b2, done as broadcast-mul + reduces so
    # no MXU push/pop sits on the critical path.  ReLU per branch, then sum.
    h_avg = jnp.maximum(jnp.sum(w1t * avg, axis=0, keepdims=True) + b1r, 0.0)  # (1, Ch)
    h_max = jnp.maximum(jnp.sum(w1t * mx, axis=0, keepdims=True) + b1r, 0.0)   # (1, Ch)
    o_avg = jnp.sum(w2 * h_avg, axis=1, keepdims=True) + b2c                   # (C, 1)
    o_max = jnp.sum(w2 * h_max, axis=1, keepdims=True) + b2c                   # (C, 1)
    ch_scale = jax.nn.sigmoid(o_avg + o_max)             # (C, 1)

    y = xv * ch_scale                                    # only needed for the pools below

    # -------------- ChannelPool -> zero-extended flat maps in VMEM ------------
    cmax = jnp.max(y, axis=0, keepdims=True)             # (1, HW)
    cmean = jnp.mean(y, axis=0, keepdims=True)           # (1, HW)

    # Zero ONLY the halos (lane-aligned, unmasked stores).  Done every step so
    # correctness does not depend on which core runs program_id == 0.
    zero_halo = jnp.zeros((2, EXT), jnp.float32)
    ext_ref[:, 0:EXT] = zero_halo
    ext_ref[:, EXT + HW:EXT + HW + EXT] = zero_halo
    ext_ref[0:1, EXT:EXT + HW] = cmax                    # interior fully overwritten
    ext_ref[1:2, EXT:EXT + HW] = cmean

    # ------ stack the K row offsets (di) along sublanes: (2K, HW + 2*pad) -----
    # band rows (2*di, 2*di+1) = (cmax, cmean) shifted by (di - pad) * W.
    # Vertical zero padding falls out of the flat zero extension.
    for di in range(K):
        base = EXT + (di - pad) * W - pad
        band_ref[2 * di:2 * di + 2, :] = ext_ref[:, base:base + HWB]

    # -------- SpatialGate 7x7 conv: 7 lane-slices + 7 sublane reductions ------
    cw = cw_ref[...]                                     # (2K, K), BN-scale folded in
    w_idx = jax.lax.broadcasted_iota(jnp.int32, (1, HW), 1) % W

    acc = jnp.zeros((1, HW), jnp.float32)
    for dj in range(K):
        sl = band_ref[:, dj:dj + HW]                     # (2K, HW) single lane-slice
        wcol = cw[:, dj:dj + 1]                          # (2K, 1) per-tap weights
        term = jnp.sum(sl * wcol, axis=0, keepdims=True)  # (1, HW) cross-sublane sum
        if dj == pad:
            acc = acc + term                             # center column: always valid
        else:
            shift = dj - pad                             # horizontal zero padding:
            maskf = ((w_idx + shift >= 0) &
                     (w_idx + shift < W)).astype(jnp.float32)
            acc = acc + term * maskf                     # multiply-by-mask (VPU-cheap)

    # BatchNorm2d(1) inference mode folded into cw + this scalar bias.
    sp_scale = jax.nn.sigmoid(acc + bnb_ref[0])          # (1, HW)

    # Recompute the channel-gated activation at the store (input block is
    # resident in VMEM) instead of keeping y live across the spatial section.
    out_ref[0] = (xv * ch_scale) * sp_scale              # lane-dense (C, HW) store


# ---------------------------------- Wrapper -----------------------------------
def cbam_forward(x, params):
    B, C, H, W = x.shape
    HW = H * W
    Ch = params["w1"].shape[0]
    K = 7
    pad = K // 2
    # lane-aligned zero extension; must cover pad*W + pad and be 128-aligned
    EXT = ((max(128, pad * W + pad) + 127) // 128) * 128

    x_flat = x.reshape(B, C, HW)

    # Fold inference-mode BatchNorm2d(1) into the conv weights + a scalar bias.
    gamma, beta, mean, var = params["bn"]
    s = gamma * jax.lax.rsqrt(var + 1e-5)
    # conv_w: (1, 2, K, K) OIHW -> (2K, K), row 2*di + c  (c=0: max map, c=1: mean map)
    cw2d = (params["conv_w"][0] * s).transpose(1, 0, 2).reshape(2 * K, K)
    bn_bias = jnp.reshape(beta - mean * s, (1,)).astype(jnp.float32)

    w1t = params["w1"].T                        # (C, Ch)
    b1r = params["b1"].reshape(1, Ch)           # (1, Ch)
    w2 = params["w2"]                           # (C, Ch)
    b2c = params["b2"].reshape(C, 1)            # (C, 1)

    kern = functools.partial(_cbam_kernel, H=H, W=W, K=K, EXT=EXT)

    out_flat = pl.pallas_call(
        kern,
        out_shape=jax.ShapeDtypeStruct((B, C, HW), jnp.float32),
        grid=(B,),
        in_specs=[
            pl.BlockSpec((1, C, HW), lambda b: (b, 0, 0)),
            pl.BlockSpec((C, Ch), lambda b: (0, 0)),
            pl.BlockSpec((1, Ch), lambda b: (0, 0)),
            pl.BlockSpec((C, Ch), lambda b: (0, 0)),
            pl.BlockSpec((C, 1), lambda b: (0, 0)),
            pl.BlockSpec((2 * K, K), lambda b: (0, 0)),          # conv weights in VMEM
            pl.BlockSpec(memory_space=pltpu.MemorySpace.SMEM),   # folded BN bias scalar
        ],
        out_specs=pl.BlockSpec((1, C, HW), lambda b: (b, 0, 0)),
        scratch_shapes=[
            pltpu.VMEM((2, HW + 2 * EXT), jnp.float32),          # flat zero-extended maps
            pltpu.VMEM((2 * K, HW + 2 * pad), jnp.float32),      # sublane-stacked conv band
        ],
        compiler_params=pltpu.CompilerParams(
            dimension_semantics=("parallel",),
            vmem_limit_bytes=32 * 1024 * 1024),
    )(x_flat, w1t, b1r, w2, b2c, cw2d, bn_bias)

    return out_flat.reshape(B, C, H, W)


# ------------------------- Pure-JAX reference (checking) ----------------------
def cbam_reference(x, params):
    avg = jnp.mean(x, axis=(2, 3))                       # (B, C)
    mx = jnp.max(x, axis=(2, 3))                         # (B, C)

    def mlp(p):
        h = p @ params["w1"].T + params["b1"][:, 0]
        h = jnp.maximum(h, 0.0)
        return h @ params["w2"].T + params["b2"][:, 0]

    att = mlp(avg) + mlp(mx)
    scale = jax.nn.sigmoid(att)[:, :, None, None]
    y = x * scale

    comp = jnp.stack([jnp.max(y, axis=1), jnp.mean(y, axis=1)], axis=1)
    conv_out = jax.lax.conv_general_dilated(
        comp, params["conv_w"], window_strides=(1, 1),
        padding=((3, 3), (3, 3)),
        dimension_numbers=("NCHW", "OIHW", "NCHW"))
    gamma, beta, mean, var = params["bn"]
    yb = (conv_out - mean) * gamma / jnp.sqrt(var + 1e-5) + beta
    s = jax.nn.sigmoid(yb)
    return y * s


# ------------------------------------ Main ------------------------------------
if __name__ == "__main__":
    B, C, H, W = 2, 32, 16, 16
    reduction_ratio = 8
    Ch = C // reduction_ratio

    key = jax.random.PRNGKey(0)
    kx, k1, k2, k3, k4, k5 = jax.random.split(key, 6)

    x = jax.random.normal(kx, (B, C, H, W), dtype=jnp.float32)

    params = {
        "w1": 0.1 * jax.random.normal(k1, (Ch, C), dtype=jnp.float32),
        "b1": 0.1 * jax.random.normal(k2, (Ch, 1), dtype=jnp.float32),
        "w2": 0.1 * jax.random.normal(k3, (C, Ch), dtype=jnp.float32),
        "b2": 0.1 * jax.random.normal(k4, (C, 1), dtype=jnp.float32),
        "conv_w": 0.1 * jax.random.normal(k5, (1, 2, 7, 7), dtype=jnp.float32),
        # gamma, beta, running_mean, running_var (inference-mode BN)
        "bn": jnp.array([1.1, 0.05, 0.02, 0.9], dtype=jnp.float32),
    }

    out = cbam_forward(x, params)
    out = jax.block_until_ready(out)

    ref = jax.block_until_ready(cbam_reference(x, params))
    np.testing.assert_allclose(np.asarray(out), np.asarray(ref),
                               rtol=1e-4, atol=1e-4)

    print("KERNEL_OK")
</pallas_src>

<mosaic_0001>
module attributes {stable_mosaic.version = 11 : i64} {
  func.func @_cbam_kernel(%arg0: i32, %arg1: memref<1x32x256xf32, #tpu.memory_space<vmem>>, %arg2: memref<32x4xf32, #tpu.memory_space<vmem>>, %arg3: memref<1x4xf32, #tpu.memory_space<vmem>>, %arg4: memref<32x4xf32, #tpu.memory_space<vmem>>, %arg5: memref<32x1xf32, #tpu.memory_space<vmem>>, %arg6: memref<14x7xf32, #tpu.memory_space<vmem>>, %arg7: memref<1xf32, #tpu.memory_space<smem>>, %arg8: memref<1x32x256xf32, #tpu.memory_space<vmem>>, %arg9: memref<2x512xf32, #tpu.memory_space<vmem>>, %arg10: memref<14x262xf32, #tpu.memory_space<vmem>>) attributes {dimension_semantics = [#tpu.dimension_semantics<parallel>], iteration_bounds = array<i64: 2>, scalar_prefetch = 0 : i64, scratch_operands = 2 : i64, tpu.core_type = #tpu.core_type<tc>, window_params = [{transform_indices = @transform_0, window_bounds = array<i64: 1, 32, 256>}, {pipeline_mode = #tpu.pipeline_mode<synchronous>, transform_indices = @transform_1, window_bounds = array<i64: 32, 4>}, {pipeline_mode = #tpu.pipeline_mode<synchronous>, transform_indices = @transform_2, window_bounds = array<i64: 1, 4>}, {pipeline_mode = #tpu.pipeline_mode<synchronous>, transform_indices = @transform_3, window_bounds = array<i64: 32, 4>}, {pipeline_mode = #tpu.pipeline_mode<synchronous>, transform_indices = @transform_4, window_bounds = array<i64: 32, 1>}, {pipeline_mode = #tpu.pipeline_mode<synchronous>, transform_indices = @transform_5, window_bounds = array<i64: 14, 7>}, {transform_indices = @transform_6, window_bounds = array<i64: 1>}, {transform_indices = @transform_7, window_bounds = array<i64: 1, 32, 256>}]} {
    %c0 = arith.constant 0 : index
    %c0_0 = arith.constant 0 : index
    %c0_1 = arith.constant 0 : index
    %0 = vector.load %arg1[%c0, %c0_0, %c0_1] : memref<1x32x256xf32, #tpu.memory_space<vmem>>, vector<1x32x256xf32>
    %1 = vector.shape_cast %0 : vector<1x32x256xf32> to vector<32x256xf32>
    %cst = arith.constant dense<0.000000e+00> : vector<32xf32>
    %2 = vector.multi_reduction <add>, %1, %cst [1] : vector<32x256xf32> to vector<32xf32>
    %3 = vector.shape_cast %2 : vector<32xf32> to vector<32x1xf32>
    %cst_2 = arith.constant 2.560000e+02 : f32
    %4 = vector.broadcast %cst_2 : f32 to vector<32x1xf32>
    %5 = arith.divf %3, %4 : vector<32x1xf32>
    %cst_3 = arith.constant dense<0xFF800000> : vector<32xf32>
    %6 = vector.multi_reduction <maximumf>, %1, %cst_3 [1] : vector<32x256xf32> to vector<32xf32>
    %7 = vector.shape_cast %6 : vector<32xf32> to vector<32x1xf32>
    %c0_4 = arith.constant 0 : index
    %c0_5 = arith.constant 0 : index
    %8 = vector.load %arg2[%c0_4, %c0_5] : memref<32x4xf32, #tpu.memory_space<vmem>>, vector<32x4xf32>
    %c0_6 = arith.constant 0 : index
    %c0_7 = arith.constant 0 : index
    %9 = vector.load %arg3[%c0_6, %c0_7] : memref<1x4xf32, #tpu.memory_space<vmem>>, vector<1x4xf32>
    %c0_8 = arith.constant 0 : index
    %c0_9 = arith.constant 0 : index
    %10 = vector.load %arg4[%c0_8, %c0_9] : memref<32x4xf32, #tpu.memory_space<vmem>>, vector<32x4xf32>
    %c0_10 = arith.constant 0 : index
    %c0_11 = arith.constant 0 : index
    %11 = vector.load %arg5[%c0_10, %c0_11] : memref<32x1xf32, #tpu.memory_space<vmem>>, vector<32x1xf32>
    %12 = vector.broadcast %5 : vector<32x1xf32> to vector<32x4xf32>
    %13 = arith.mulf %8, %12 : vector<32x4xf32>
    %cst_12 = arith.constant dense<0.000000e+00> : vector<4xf32>
    %14 = vector.multi_reduction <add>, %13, %cst_12 [0] : vector<32x4xf32> to vector<4xf32>
    %15 = vector.shape_cast %14 : vector<4xf32> to vector<1x4xf32>
    %16 = arith.addf %15, %9 : vector<1x4xf32>
    %cst_13 = arith.constant 0.000000e+00 : f32
    %17 = vector.broadcast %cst_13 : f32 to vector<1x4xf32>
    %18 = arith.maximumf %16, %17 : vector<1x4xf32>
    %19 = vector.broadcast %7 : vector<32x1xf32> to vector<32x4xf32>
    %20 = arith.mulf %8, %19 : vector<32x4xf32>
    %cst_14 = arith.constant dense<0.000000e+00> : vector<4xf32>
    %21 = vector.multi_reduction <add>, %20, %cst_14 [0] : vector<32x4xf32> to vector<4xf32>
    %22 = vector.shape_cast %21 : vector<4xf32> to vector<1x4xf32>
    %23 = arith.addf %22, %9 : vector<1x4xf32>
    %cst_15 = arith.constant 0.000000e+00 : f32
    %24 = vector.broadcast %cst_15 : f32 to vector<1x4xf32>
    %25 = arith.maximumf %23, %24 : vector<1x4xf32>
    %26 = vector.broadcast %18 : vector<1x4xf32> to vector<32x4xf32>
    %27 = arith.mulf %10, %26 : vector<32x4xf32>
    %cst_16 = arith.constant dense<0.000000e+00> : vector<32xf32>
    %28 = vector.multi_reduction <add>, %27, %cst_16 [1] : vector<32x4xf32> to vector<32xf32>
    %29 = vector.shape_cast %28 : vector<32xf32> to vector<32x1xf32>
    %30 = arith.addf %29, %11 : vector<32x1xf32>
    %31 = vector.broadcast %25 : vector<1x4xf32> to vector<32x4xf32>
    %32 = arith.mulf %10, %31 : vector<32x4xf32>
    %cst_17 = arith.constant dense<0.000000e+00> : vector<32xf32>
    %33 = vector.multi_reduction <add>, %32, %cst_17 [1] : vector<32x4xf32> to vector<32xf32>
    %34 = vector.shape_cast %33 : vector<32xf32> to vector<32x1xf32>
    %35 = arith.addf %34, %11 : vector<32x1xf32>
    %36 = arith.addf %30, %35 : vector<32x1xf32>
    %37 = arith.negf %36 : vector<32x1xf32>
    %38 = math.exp %37 : vector<32x1xf32>
    %cst_18 = arith.constant 1.000000e+00 : f32
    %39 = vector.broadcast %cst_18 : f32 to vector<32x1xf32>
    %40 = arith.addf %39, %38 : vector<32x1xf32>
    %41 = arith.divf %39, %40 : vector<32x1xf32>
    %42 = vector.broadcast %41 : vector<32x1xf32> to vector<32x256xf32>
    %43 = arith.mulf %1, %42 : vector<32x256xf32>
    %cst_19 = arith.constant dense<0xFF800000> : vector<256xf32>
    %44 = vector.multi_reduction <maximumf>, %43, %cst_19 [0] : vector<32x256xf32> to vector<256xf32>
    %45 = vector.shape_cast %44 : vector<256xf32> to vector<1x256xf32>
    %cst_20 = arith.constant dense<0.000000e+00> : vector<256xf32>
    %46 = vector.multi_reduction <add>, %43, %cst_20 [0] : vector<32x256xf32> to vector<256xf32>
    %47 = vector.shape_cast %46 : vector<256xf32> to vector<1x256xf32>
    %cst_21 = arith.constant 3.200000e+01 : f32
    %48 = vector.broadcast %cst_21 : f32 to vector<1x256xf32>
    %49 = arith.divf %47, %48 : vector<1x256xf32>
    %cst_22 = arith.constant 0.000000e+00 : f32
    %50 = vector.broadcast %cst_22 : f32 to vector<2x128xf32>
    %c0_23 = arith.constant 0 : index
    %c0_24 = arith.constant 0 : index
    %51 = vector.load %arg9[%c0_23, %c0_24] : memref<2x512xf32, #tpu.memory_space<vmem>>, vector<2x128xf32>
    tpu.vector_store %arg9[%c0_23, %c0_24], %50 {strides = array<i32>} : memref<2x512xf32, #tpu.memory_space<vmem>>, vector<2x128xf32>,
    %c0_25 = arith.constant 0 : index
    %c384 = arith.constant 384 : index
    %52 = vector.load %arg9[%c0_25, %c384] : memref<2x512xf32, #tpu.memory_space<vmem>>, vector<2x128xf32>
    tpu.vector_store %arg9[%c0_25, %c384], %50 {strides = array<i32>} : memref<2x512xf32, #tpu.memory_space<vmem>>, vector<2x128xf32>,
    %c0_26 = arith.constant 0 : index
    %c128 = arith.constant 128 : index
    %53 = vector.load %arg9[%c0_26, %c128] : memref<2x512xf32, #tpu.memory_space<vmem>>, vector<1x256xf32>
    tpu.vector_store %arg9[%c0_26, %c128], %45 {strides = array<i32>} : memref<2x512xf32, #tpu.memory_space<vmem>>, vector<1x256xf32>,
    %c1 = arith.constant 1 : index
    %c128_27 = arith.constant 128 : index
    %54 = vector.load %arg9[%c1, %c128_27] : memref<2x512xf32, #tpu.memory_space<vmem>>, vector<1x256xf32>
    tpu.vector_store %arg9[%c1, %c128_27], %49 {strides = array<i32>} : memref<2x512xf32, #tpu.memory_space<vmem>>, vector<1x256xf32>,
    %c0_28 = arith.constant 0 : index
    %c77 = arith.constant 77 : index
    %55 = vector.load %arg9[%c0_28, %c77] : memref<2x512xf32, #tpu.memory_space<vmem>>, vector<2x262xf32>
    %c0_29 = arith.constant 0 : index
    %c0_30 = arith.constant 0 : index
    %56 = vector.load %arg10[%c0_29, %c0_30] : memref<14x262xf32, #tpu.memory_space<vmem>>, vector<2x262xf32>
    tpu.vector_store %arg10[%c0_29, %c0_30], %55 {strides = array<i32>} : memref<14x262xf32, #tpu.memory_space<vmem>>, vector<2x262xf32>,
    %c0_31 = arith.constant 0 : index
    %c93 = arith.constant 93 : index
    %57 = vector.load %arg9[%c0_31, %c93] : memref<2x512xf32, #tpu.memory_space<vmem>>, vector<2x262xf32>
    %c2 = arith.constant 2 : index
    %c0_32 = arith.constant 0 : index
    %58 = vector.load %arg10[%c2, %c0_32] : memref<14x262xf32, #tpu.memory_space<vmem>>, vector<2x262xf32>
    tpu.vector_store %arg10[%c2, %c0_32], %57 {strides = array<i32>} : memref<14x262xf32, #tpu.memory_space<vmem>>, vector<2x262xf32>,
    %c0_33 = arith.constant 0 : index
    %c109 = arith.constant 109 : index
    %59 = vector.load %arg9[%c0_33, %c109] : memref<2x512xf32, #tpu.memory_space<vmem>>, vector<2x262xf32>
    %c4 = arith.constant 4 : index
    %c0_34 = arith.constant 0 : index
    %60 = vector.load %arg10[%c4, %c0_34] : memref<14x262xf32, #tpu.memory_space<vmem>>, vector<2x262xf32>
    tpu.vector_store %arg10[%c4, %c0_34], %59 {strides = array<i32>} : memref<14x262xf32, #tpu.memory_space<vmem>>, vector<2x262xf32>,
    %c0_35 = arith.constant 0 : index
    %c125 = arith.constant 125 : index
    %61 = vector.load %arg9[%c0_35, %c125] : memref<2x512xf32, #tpu.memory_space<vmem>>, vector<2x262xf32>
    %c6 = arith.constant 6 : index
    %c0_36 = arith.constant 0 : index
    %62 = vector.load %arg10[%c6, %c0_36] : memref<14x262xf32, #tpu.memory_space<vmem>>, vector<2x262xf32>
    tpu.vector_store %arg10[%c6, %c0_36], %61 {strides = array<i32>} : memref<14x262xf32, #tpu.memory_space<vmem>>, vector<2x262xf32>,
    %c0_37 = arith.constant 0 : index
    %c141 = arith.constant 141 : index
    %63 = vector.load %arg9[%c0_37, %c141] : memref<2x512xf32, #tpu.memory_space<vmem>>, vector<2x262xf32>
    %c8 = arith.constant 8 : index
    %c0_38 = arith.constant 0 : index
    %64 = vector.load %arg10[%c8, %c0_38] : memref<14x262xf32, #tpu.memory_space<vmem>>, vector<2x262xf32>
    tpu.vector_store %arg10[%c8, %c0_38], %63 {strides = array<i32>} : memref<14x262xf32, #tpu.memory_space<vmem>>, vector<2x262xf32>,
    %c0_39 = arith.constant 0 : index
    %c157 = arith.constant 157 : index
    %65 = vector.load %arg9[%c0_39, %c157] : memref<2x512xf32, #tpu.memory_space<vmem>>, vector<2x262xf32>
    %c10 = arith.constant 10 : index
    %c0_40 = arith.constant 0 : index
    %66 = vector.load %arg10[%c10, %c0_40] : memref<14x262xf32, #tpu.memory_space<vmem>>, vector<2x262xf32>
    tpu.vector_store %arg10[%c10, %c0_40], %65 {strides = array<i32>} : memref<14x262xf32, #tpu.memory_space<vmem>>, vector<2x262xf32>,
    %c0_41 = arith.constant 0 : index
    %c173 = arith.constant 173 : index
    %67 = vector.load %arg9[%c0_41, %c173] : memref<2x512xf32, #tpu.memory_space<vmem>>, vector<2x262xf32>
    %c12 = arith.constant 12 : index
    %c0_42 = arith.constant 0 : index
    %68 = vector.load %arg10[%c12, %c0_42] : memref<14x262xf32, #tpu.memory_space<vmem>>, vector<2x262xf32>
    tpu.vector_store %arg10[%c12, %c0_42], %67 {strides = array<i32>} : memref<14x262xf32, #tpu.memory_space<vmem>>, vector<2x262xf32>,
    %c0_43 = arith.constant 0 : index
    %c0_44 = arith.constant 0 : index
    %69 = vector.load %arg6[%c0_43, %c0_44] : memref<14x7xf32, #tpu.memory_space<vmem>>, vector<14x7xf32>
    %70 = tpu.iota {dimensions = array<i32: 1>} : vector<1x256xi32>
    %c16_i32 = arith.constant 16 : i32
    %c0_i32 = arith.constant 0 : i32
    %71 = arith.cmpi eq, %c16_i32, %c0_i32 : i32
    %c1_i32 = arith.constant 1 : i32
    %72 = arith.select %71, %c1_i32, %c16_i32 : i32
    %73 = vector.broadcast %72 : i32 to vector<1x256xi32>
    %74 = arith.remsi %70, %73 : vector<1x256xi32>
    %c0_i32_45 = arith.constant 0 : i32
    %75 = vector.broadcast %c0_i32_45 : i32 to vector<1x256xi32>
    %76 = arith.cmpi ne, %74, %75 : vector<1x256xi32>
    %c0_i32_46 = arith.constant 0 : i32
    %77 = vector.broadcast %c0_i32_46 : i32 to vector<1x256xi32>
    %78 = arith.cmpi slt, %74, %77 : vector<1x256xi32>
    %c0_i32_47 = arith.constant 0 : i32
    %79 = arith.cmpi slt, %72, %c0_i32_47 : i32
    %80 = vector.broadcast %79 : i1 to vector<1x256xi1>
    %81 = vector.broadcast %80 : vector<1x256xi1> to vector<1x256xi1>
    %82 = arith.xori %78, %81 : vector<1x256xi1>
    %83 = arith.andi %82, %76 : vector<1x256xi1>
    %84 = vector.broadcast %72 : i32 to vector<1x256xi32>
    %85 = arith.addi %74, %84 : vector<1x256xi32>
    %86 = arith.select %83, %85, %74 : vector<1x256xi1>, vector<1x256xi32>
    %cst_48 = arith.constant 0.000000e+00 : f32
    %87 = vector.broadcast %cst_48 : f32 to vector<1x256xf32>
    %c0_49 = arith.constant 0 : index
    %c0_50 = arith.constant 0 : index
    %88 = vector.load %arg10[%c0_49, %c0_50] : memref<14x262xf32, #tpu.memory_space<vmem>>, vector<14x256xf32>
    %89 = vector.extract_strided_slice %69 {offsets = [0, 0], sizes = [14, 1], strides = [1, 1]} : vector<14x7xf32> to vector<14x1xf32>
    %90 = vector.broadcast %89 : vector<14x1xf32> to vector<14x256xf32>
    %91 = arith.mulf %88, %90 : vector<14x256xf32>
    %cst_51 = arith.constant dense<0.000000e+00> : vector<256xf32>
    %92 = vector.multi_reduction <add>, %91, %cst_51 [0] : vector<14x256xf32> to vector<256xf32>
    %93 = vector.shape_cast %92 : vector<256xf32> to vector<1x256xf32>
    %c-3_i32 = arith.constant -3 : i32
    %94 = vector.broadcast %c-3_i32 : i32 to vector<1x256xi32>
    %95 = arith.addi %86, %94 : vector<1x256xi32>
    %c0_i32_52 = arith.constant 0 : i32
    %96 = vector.broadcast %c0_i32_52 : i32 to vector<1x256xi32>
    %97 = arith.cmpi sge, %95, %96 : vector<1x256xi32>
    %c-3_i32_53 = arith.constant -3 : i32
    %98 = vector.broadcast %c-3_i32_53 : i32 to vector<1x256xi32>
    %99 = arith.addi %86, %98 : vector<1x256xi32>
    %c16_i32_54 = arith.constant 16 : i32
    %100 = vector.broadcast %c16_i32_54 : i32 to vector<1x256xi32>
    %101 = arith.cmpi slt, %99, %100 : vector<1x256xi32>
    %102 = arith.andi %97, %101 : vector<1x256xi1>
    %103 = arith.extui %102 : vector<1x256xi1> to vector<1x256xi32>
    %104 = arith.sitofp %103 : vector<1x256xi32> to vector<1x256xf32>
    %105 = arith.mulf %93, %104 : vector<1x256xf32>
    %106 = arith.addf %87, %105 : vector<1x256xf32>
    %c0_55 = arith.constant 0 : index
    %c1_56 = arith.constant 1 : index
    %107 = vector.load %arg10[%c0_55, %c1_56] : memref<14x262xf32, #tpu.memory_space<vmem>>, vector<14x256xf32>
    %108 = vector.extract_strided_slice %69 {offsets = [0, 1], sizes = [14, 1], strides = [1, 1]} : vector<14x7xf32> to vector<14x1xf32>
    %109 = vector.broadcast %108 : vector<14x1xf32> to vector<14x256xf32>
    %110 = arith.mulf %107, %109 : vector<14x256xf32>
    %cst_57 = arith.constant dense<0.000000e+00> : vector<256xf32>
    %111 = vector.multi_reduction <add>, %110, %cst_57 [0] : vector<14x256xf32> to vector<256xf32>
    %112 = vector.shape_cast %111 : vector<256xf32> to vector<1x256xf32>
    %c-2_i32 = arith.constant -2 : i32
    %113 = vector.broadcast %c-2_i32 : i32 to vector<1x256xi32>
    %114 = arith.addi %86, %113 : vector<1x256xi32>
    %c0_i32_58 = arith.constant 0 : i32
    %115 = vector.broadcast %c0_i32_58 : i32 to vector<1x256xi32>
    %116 = arith.cmpi sge, %114, %115 : vector<1x256xi32>
    %c-2_i32_59 = arith.constant -2 : i32
    %117 = vector.broadcast %c-2_i32_59 : i32 to vector<1x256xi32>
    %118 = arith.addi %86, %117 : vector<1x256xi32>
    %c16_i32_60 = arith.constant 16 : i32
    %119 = vector.broadcast %c16_i32_60 : i32 to vector<1x256xi32>
    %120 = arith.cmpi slt, %118, %119 : vector<1x256xi32>
    %121 = arith.andi %116, %120 : vector<1x256xi1>
    %122 = arith.extui %121 : vector<1x256xi1> to vector<1x256xi32>
    %123 = arith.sitofp %122 : vector<1x256xi32> to vector<1x256xf32>
    %124 = arith.mulf %112, %123 : vector<1x256xf32>
    %125 = arith.addf %106, %124 : vector<1x256xf32>
    %c0_61 = arith.constant 0 : index
    %c2_62 = arith.constant 2 : index
    %126 = vector.load %arg10[%c0_61, %c2_62] : memref<14x262xf32, #tpu.memory_space<vmem>>, vector<14x256xf32>
    %127 = vector.extract_strided_slice %69 {offsets = [0, 2], sizes = [14, 1], strides = [1, 1]} : vector<14x7xf32> to vector<14x1xf32>
    %128 = vector.broadcast %127 : vector<14x1xf32> to vector<14x256xf32>
    %129 = arith.mulf %126, %128 : vector<14x256xf32>
    %cst_63 = arith.constant dense<0.000000e+00> : vector<256xf32>
    %130 = vector.multi_reduction <add>, %129, %cst_63 [0] : vector<14x256xf32> to vector<256xf32>
    %131 = vector.shape_cast %130 : vector<256xf32> to vector<1x256xf32>
    %c-1_i32 = arith.constant -1 : i32
    %132 = vector.broadcast %c-1_i32 : i32 to vector<1x256xi32>
    %133 = arith.addi %86, %132 : vector<1x256xi32>
    %c0_i32_64 = arith.constant 0 : i32
    %134 = vector.broadcast %c0_i32_64 : i32 to vector<1x256xi32>
    %135 = arith.cmpi sge, %133, %134 : vector<1x256xi32>
    %c-1_i32_65 = arith.constant -1 : i32
    %136 = vector.broadcast %c-1_i32_65 : i32 to vector<1x256xi32>
    %137 = arith.addi %86, %136 : vector<1x256xi32>
    %c16_i32_66 = arith.constant 16 : i32
    %138 = vector.broadcast %c16_i32_66 : i32 to vector<1x256xi32>
    %139 = arith.cmpi slt, %137, %138 : vector<1x256xi32>
    %140 = arith.andi %135, %139 : vector<1x256xi1>
    %141 = arith.extui %140 : vector<1x256xi1> to vector<1x256xi32>
    %142 = arith.sitofp %141 : vector<1x256xi32> to vector<1x256xf32>
    %143 = arith.mulf %131, %142 : vector<1x256xf32>
    %144 = arith.addf %125, %143 : vector<1x256xf32>
    %c0_67 = arith.constant 0 : index
    %c3 = arith.constant 3 : index
    %145 = vector.load %arg10[%c0_67, %c3] : memref<14x262xf32, #tpu.memory_space<vmem>>, vector<14x256xf32>
    %146 = vector.extract_strided_slice %69 {offsets = [0, 3], sizes = [14, 1], strides = [1, 1]} : vector<14x7xf32> to vector<14x1xf32>
    %147 = vector.broadcast %146 : vector<14x1xf32> to vector<14x256xf32>
    %148 = arith.mulf %145, %147 : vector<14x256xf32>
    %cst_68 = arith.constant dense<0.000000e+00> : vector<256xf32>
    %149 = vector.multi_reduction <add>, %148, %cst_68 [0] : vector<14x256xf32> to vector<256xf32>
    %150 = vector.shape_cast %149 : vector<256xf32> to vector<1x256xf32>
    %151 = arith.addf %144, %150 : vector<1x256xf32>
    %c0_69 = arith.constant 0 : index
    %c4_70 = arith.constant 4 : index
    %152 = vector.load %arg10[%c0_69, %c4_70] : memref<14x262xf32, #tpu.memory_space<vmem>>, vector<14x256xf32>
    %153 = vector.extract_strided_slice %69 {offsets = [0, 4], sizes = [14, 1], strides = [1, 1]} : vector<14x7xf32> to vector<14x1xf32>
    %154 = vector.broadcast %153 : vector<14x1xf32> to vector<14x256xf32>
    %155 = arith.mulf %152, %154 : vector<14x256xf32>
    %cst_71 = arith.constant dense<0.000000e+00> : vector<256xf32>
    %156 = vector.multi_reduction <add>, %155, %cst_71 [0] : vector<14x256xf32> to vector<256xf32>
    %157 = vector.shape_cast %156 : vector<256xf32> to vector<1x256xf32>
    %c1_i32_72 = arith.constant 1 : i32
    %158 = vector.broadcast %c1_i32_72 : i32 to vector<1x256xi32>
    %159 = arith.addi %86, %158 : vector<1x256xi32>
    %c0_i32_73 = arith.constant 0 : i32
    %160 = vector.broadcast %c0_i32_73 : i32 to vector<1x256xi32>
    %161 = arith.cmpi sge, %159, %160 : vector<1x256xi32>
    %c1_i32_74 = arith.constant 1 : i32
    %162 = vector.broadcast %c1_i32_74 : i32 to vector<1x256xi32>
    %163 = arith.addi %86, %162 : vector<1x256xi32>
    %c16_i32_75 = arith.constant 16 : i32
    %164 = vector.broadcast %c16_i32_75 : i32 to vector<1x256xi32>
    %165 = arith.cmpi slt, %163, %164 : vector<1x256xi32>
    %166 = arith.andi %161, %165 : vector<1x256xi1>
    %167 = arith.extui %166 : vector<1x256xi1> to vector<1x256xi32>
    %168 = arith.sitofp %167 : vector<1x256xi32> to vector<1x256xf32>
    %169 = arith.mulf %157, %168 : vector<1x256xf32>
    %170 = arith.addf %151, %169 : vector<1x256xf32>
    %c0_76 = arith.constant 0 : index
    %c5 = arith.constant 5 : index
    %171 = vector.load %arg10[%c0_76, %c5] : memref<14x262xf32, #tpu.memory_space<vmem>>, vector<14x256xf32>
    %172 = vector.extract_strided_slice %69 {offsets = [0, 5], sizes = [14, 1], strides = [1, 1]} : vector<14x7xf32> to vector<14x1xf32>
    %173 = vector.broadcast %172 : vector<14x1xf32> to vector<14x256xf32>
    %174 = arith.mulf %171, %173 : vector<14x256xf32>
    %cst_77 = arith.constant dense<0.000000e+00> : vector<256xf32>
    %175 = vector.multi_reduction <add>, %174, %cst_77 [0] : vector<14x256xf32> to vector<256xf32>
    %176 = vector.shape_cast %175 : vector<256xf32> to vector<1x256xf32>
    %c2_i32 = arith.constant 2 : i32
    %177 = vector.broadcast %c2_i32 : i32 to vector<1x256xi32>
    %178 = arith.addi %86, %177 : vector<1x256xi32>
    %c0_i32_78 = arith.constant 0 : i32
    %179 = vector.broadcast %c0_i32_78 : i32 to vector<1x256xi32>
    %180 = arith.cmpi sge, %178, %179 : vector<1x256xi32>
    %c2_i32_79 = arith.constant 2 : i32
    %181 = vector.broadcast %c2_i32_79 : i32 to vector<1x256xi32>
    %182 = arith.addi %86, %181 : vector<1x256xi32>
    %c16_i32_80 = arith.constant 16 : i32
    %183 = vector.broadcast %c16_i32_80 : i32 to vector<1x256xi32>
    %184 = arith.cmpi slt, %182, %183 : vector<1x256xi32>
    %185 = arith.andi %180, %184 : vector<1x256xi1>
    %186 = arith.extui %185 : vector<1x256xi1> to vector<1x256xi32>
    %187 = arith.sitofp %186 : vector<1x256xi32> to vector<1x256xf32>
    %188 = arith.mulf %176, %187 : vector<1x256xf32>
    %189 = arith.addf %170, %188 : vector<1x256xf32>
    %c0_81 = arith.constant 0 : index
    %c6_82 = arith.constant 6 : index
    %190 = vector.load %arg10[%c0_81, %c6_82] : memref<14x262xf32, #tpu.memory_space<vmem>>, vector<14x256xf32>
    %191 = vector.extract_strided_slice %69 {offsets = [0, 6], sizes = [14, 1], strides = [1, 1]} : vector<14x7xf32> to vector<14x1xf32>
    %192 = vector.broadcast %191 : vector<14x1xf32> to vector<14x256xf32>
    %193 = arith.mulf %190, %192 : vector<14x256xf32>
    %cst_83 = arith.constant dense<0.000000e+00> : vector<256xf32>
    %194 = vector.multi_reduction <add>, %193, %cst_83 [0] : vector<14x256xf32> to vector<256xf32>
    %195 = vector.shape_cast %194 : vector<256xf32> to vector<1x256xf32>
    %c3_i32 = arith.constant 3 : i32
    %196 = vector.broadcast %c3_i32 : i32 to vector<1x256xi32>
    %197 = arith.addi %86, %196 : vector<1x256xi32>
    %c0_i32_84 = arith.constant 0 : i32
    %198 = vector.broadcast %c0_i32_84 : i32 to vector<1x256xi32>
    %199 = arith.cmpi sge, %197, %198 : vector<1x256xi32>
    %c3_i32_85 = arith.constant 3 : i32
    %200 = vector.broadcast %c3_i32_85 : i32 to vector<1x256xi32>
    %201 = arith.addi %86, %200 : vector<1x256xi32>
    %c16_i32_86 = arith.constant 16 : i32
    %202 = vector.broadcast %c16_i32_86 : i32 to vector<1x256xi32>
    %203 = arith.cmpi slt, %201, %202 : vector<1x256xi32>
    %204 = arith.andi %199, %203 : vector<1x256xi1>
    %205 = arith.extui %204 : vector<1x256xi1> to vector<1x256xi32>
    %206 = arith.sitofp %205 : vector<1x256xi32> to vector<1x256xf32>
    %207 = arith.mulf %195, %206 : vector<1x256xf32>
    %208 = arith.addf %189, %207 : vector<1x256xf32>
    %c0_87 = arith.constant 0 : index
    %209 = memref.load %arg7[%c0_87] : memref<1xf32, #tpu.memory_space<smem>>
    %210 = vector.broadcast %209 : f32 to vector<1x256xf32>
    %211 = arith.addf %208, %210 : vector<1x256xf32>
    %212 = arith.negf %211 : vector<1x256xf32>
    %213 = math.exp %212 : vector<1x256xf32>
    %cst_88 = arith.constant 1.000000e+00 : f32
    %214 = vector.broadcast %cst_88 : f32 to vector<1x256xf32>
    %215 = arith.addf %214, %213 : vector<1x256xf32>
    %216 = arith.divf %214, %215 : vector<1x256xf32>
    %217 = vector.broadcast %41 : vector<32x1xf32> to vector<32x256xf32>
    %218 = arith.mulf %1, %217 : vector<32x256xf32>
    %219 = vector.broadcast %216 : vector<1x256xf32> to vector<32x256xf32>
    %220 = arith.mulf %218, %219 : vector<32x256xf32>
    %c0_89 = arith.constant 0 : index
    %c0_90 = arith.constant 0 : index
    %c0_91 = arith.constant 0 : index
    %221 = vector.load %arg8[%c0_89, %c0_90, %c0_91] : memref<1x32x256xf32, #tpu.memory_space<vmem>>, vector<1x32x256xf32>
    %222 = vector.shape_cast %221 : vector<1x32x256xf32> to vector<32x256xf32>
    %223 = vector.shape_cast %220 : vector<32x256xf32> to vector<1x32x256xf32>
    tpu.vector_store %arg8[%c0_89, %c0_90, %c0_91], %223 {strides = array<i32>} : memref<1x32x256xf32, #tpu.memory_space<vmem>>, vector<1x32x256xf32>,
    return
  }
  func.func @transform_0(%arg0: i32) -> (i32, i32, i32) {
    %c0_i32 = arith.constant 0 : i32
    %c0_i32_0 = arith.constant 0 : i32
    %c0_i32_1 = arith.constant 0 : i32
    return %arg0, %c0_i32, %c0_i32_0 : i32, i32, i32
  }
  func.func @transform_1(%arg0: i32) -> (i32, i32) {
    %c0_i32 = arith.constant 0 : i32
    %c0_i32_0 = arith.constant 0 : i32
    %c0_i32_1 = arith.constant 0 : i32
    return %c0_i32, %c0_i32_0 : i32, i32
  }
  func.func @transform_2(%arg0: i32) -> (i32, i32) {
    %c0_i32 = arith.constant 0 : i32
    %c0_i32_0 = arith.constant 0 : i32
    %c0_i32_1 = arith.constant 0 : i32
    return %c0_i32, %c0_i32_0 : i32, i32
  }
  func.func @transform_3(%arg0: i32) -> (i32, i32) {
    %c0_i32 = arith.constant 0 : i32
    %c0_i32_0 = arith.constant 0 : i32
    %c0_i32_1 = arith.constant 0 : i32
    return %c0_i32, %c0_i32_0 : i32, i32
  }
  func.func @transform_4(%arg0: i32) -> (i32, i32) {
    %c0_i32 = arith.constant 0 : i32
    %c0_i32_0 = arith.constant 0 : i32
    %c0_i32_1 = arith.constant 0 : i32
    return %c0_i32, %c0_i32_0 : i32, i32
  }
  func.func @transform_5(%arg0: i32) -> (i32, i32) {
    %c0_i32 = arith.constant 0 : i32
    %c0_i32_0 = arith.constant 0 : i32
    %c0_i32_1 = arith.constant 0 : i32
    return %c0_i32, %c0_i32_0 : i32, i32
  }
  func.func @transform_6(%arg0: i32) -> i32 {
    %c0_i32 = arith.constant 0 : i32
    %c0_i32_0 = arith.constant 0 : i32
    return %c0_i32 : i32
  }
  func.func @transform_7(%arg0: i32) -> (i32, i32, i32) {
    %c0_i32 = arith.constant 0 : i32
    %c0_i32_0 = arith.constant 0 : i32
    %c0_i32_1 = arith.constant 0 : i32
    return %arg0, %c0_i32, %c0_i32_0 : i32, i32, i32
  }
}

</mosaic_0001>

<bundles_post_ra>
// kernel: tpu_custom_call.1
= control target key start
LH: loop header
LB: loop body
LE: loop exit
PB: predicated region body
PF: predicated region fallthrough
CT: control target
= control target key end

     0   :  { %s2438_s0 = inlined_call_operand.vmem [shape: f32[2,32,256], index: 0, kind: input, shape index: {}]   ;;  %s2439_s1 = inlined_call_operand.vmem [shape: f32[32,4], index: 1, kind: input, shape index: {}]   ;;  %s2440_s2 = inlined_call_operand.hbm [shape: f32[1,4], index: 2, kind: input, shape index: {}]   ;;  %s2441_s3 = inlined_call_operand.vmem [shape: f32[32,4], index: 3, kind: input, shape index: {}]   ;;  %s2442_s4 = inlined_call_operand.vmem [shape: f32[32,1], index: 4, kind: input, shape index: {}]   ;;  %s2443_s5 = inlined_call_operand.vmem [shape: f32[14,7], index: 5, kind: input, shape index: {}]   ;;  %s2444_s6 = inlined_call_operand.<no memory space> [shape: f32[1], index: 6, kind: input, shape index: {}]   ;;  %s2445_s7 = inlined_call_operand.hbm [shape: f32[2,32,256], index: 7, kind: output, shape index: {}]  }
   0x1   :  { %12 = sst [smem:[#allocation4]] %s2444_s6 }
   0x2   :  { %13 = vsyncpa [#allocation6], 0 }
   0x3   :  { %14 = vsyncpa [#allocation7], 0 }
   0x4   :  { %16 = vsyncpa [#allocation7 + $0x1], 0  ;;  %s1859_s26 = smov 0   ;;  %s1861_s27 = smov 0  }
   0x5   :  { %s1863_s28 = smov 0   ;;  %s1865_s29 = smov 0  }
   0x6 LB: > { %s1880_s6 = sadd.s32 4294967295, %s1782_s29   ;;  %s1507_s30 = sadd.s32 4294967294, %s1782_s29   ;;  %s1782_s29 = sphi %s1865_s29, %s2459_s29   ;;  %s1778_s28 = sphi %s1863_s28, %s2458_s28   ;;  %s1774_s27 = sphi %s1861_s27, %s2457_s27   ;;  %s1770_s26 = sphi %s1859_s26, %s2456_s26  }
   0x7   : > { %s1884_s8 = sadd.s32 1, %s1782_s29   ;;  %s181_s9 = sadd.s32 1, %s1778_s28 }
   0x8   : > { %s178_s10 = ssub.s32 %s1782_s29, %s1884_s8  ;;  %p191_p0 = scmp.ne.s32.totalorder %s1778_s28, %s1774_s27 }
   0x9   : > { %p179_p1 = scmp.eq.s32.totalorder %s178_s10, 0  ;;  %p192_p2 = scmp.eq.s32.totalorder %s1880_s6, 1 }
   0xa   : > { %p197_p3 = scmp.ne.s32.totalorder %s1774_s27, %s1770_s26  ;;  %p198_p4 = scmp.eq.s32.totalorder %s1507_s30, 1 }
   0xb   : > { %s1895_s11 = scalar_select %p179_p1, %s1778_s28, %s181_s9  }
   0xc   : > { %p1897_p5 = por %p192_p2, %p191_p0  ;;  %p1901_p6 = por %p198_p4, %p197_p3 }
   0xd   : > { %p1508_p7 = scmp.ge.s32.totalorder %s1782_s29, 1  ;;  %p205_p8 = scmp.lt.s32.totalorder %s1782_s29, 3 }
   0xe   : > { %p1555_p9 = scmp.eq.s32.totalorder %s1880_s6, 0  ;;  %s1784_s15 = smov [#allocation5]  }
   0xf   : > { %p1908_p10 = pnand %p1508_p7, %p205_p8  ;;  %s221_s16 = sshll.u32 %s1784_s15, 4  ;;  %s222_s16 = int_to_ptr.vmem [resolvable:$true] %s221_s16 }
  0x10   : > { %s1703_s17 = scalar_lea.vmem %s222_s16, 16  ;;  %s1710_s18 = scalar_lea.vmem %s222_s16, 32 }
  0x11   : > { %p1547_p11 = pneg %p1908_p10  ;;  %p1704_p0 = scmp.ne.s32.totalorder %s222_s16, %s1703_s17 }
  0x12   : > { %p1711_p3 = scmp.lt.s32.totalorder %s222_s16, %s222_s16  ;;  %p1712_p4 = scmp.lt.s32.totalorder %s1710_s18, %s1703_s17 }
  0x13   : > { %p1548_p12 = pnand %p1555_p9, %p1547_p11 }
  0x14   : > { %p1713_p7 = por %p1712_p4, %p1711_p3 }
  0x15   : > { %p1694_p13 = pneg %p1548_p12 }
  0x17   : > { %p1706_p1 = pnand %p1704_p0, %p1694_p13 }
  0x19   : > { %p1707_p2 = pneg %p1706_p1 }
  0x1b   : > { %p1714_p8 = pnand %p1713_p7, %p1707_p2 }
  0x1d   : > { %1717 = shalt.err (!%p1714_p8)
}
  0x1e   : > { %1550 = dma.hbm_to_vmem [thread:$0]  (!%p1548_p12), %s2440_s2, 16, %s222_s16, [#allocation6]  }
  0x1f   : > { %254 = sbr.rel (%p1908_p10) target bundleno = 984 (0x3d8), region = 48 }
  0x24   : > { %1761 = dma.done.wait (%p1555_p9), [#allocation6], 16  }
  0x25   : > { %1763 = vsyncadd (%p1555_p9), [#allocation6], 4294967280  ;;  %p286_p11 = scmp.lt.s32.totalorder %s1880_s6, 1  ;;  %v328_v19 = vld [vmem:[%s2439_s1] sm:$0xff]  ;;  %v329_v23 = vld [vmem:[%s2439_s1 + $0x8] sm:$0xff]  ;;  %vm345_vm0 = vcmask 31744   ;;  %v380_v62 = vlaneseq }
  0x26   : > { %v330_v24 = vld [vmem:[%s2439_s1 + $0x10] sm:$0xff]  ;;  %v331_v30 = vld [vmem:[%s2439_s1 + $0x18] sm:$0xff]  ;;  %s1792_s24 = smov 19   ;;  %s1794_s30 = smov 3   ;;  %vm635_vm12 = vcmask 44034   ;;  %vm593_vm13 = vcmask 416768  }
  0x27   : > { %s287_s21 = scalar_select %p286_p11, %s1880_s6, 1  ;;  %v332_v63 = vld [vmem:[#allocation5] sm:$0x1]  ;;  %vm545_vm1 = vcmp.lt.s32.totalorder %v380_v62, 256  ;;  %vm662_vm14 = vcmask 154624   ;;  %vm734_vm15 = vcmask 941056  }
  0x28   : > { %s1795_s9 = smov 115   ;;  %s1796_s10 = smov 99  }
  0x29   : > { %s1539_s22 = sshll.u32 %s287_s21, 6  ;;  %s1797_s14 = smov 35  }
  0x2a   : > { %s290_s25 = scalar_lea.vmem %s2438_s0, %s1539_s22  ;;  %s1798_s15 = smov 83  }
  0x2b   : > { %v1930_v0 = vld [vmem:[%s290_s25 + $0x20] sm:$0xff]  ;;  %v1932_v1 = vld [vmem:[%s290_s25 + $0x28] sm:$0xff]  ;;  %v1940_v5 = vld [vmem:[%s290_s25 + $0x10] sm:$0xff]  ;;  %s1801_s16 = smov 2   ;;  %s1802_s17 = smov 5  }
  0x2c   : > { %v1934_v2 = vld [vmem:[%s290_s25] sm:$0xff]  ;;  %v305_v3 = vadd.f32 %v1932_v1, %v1930_v0  ;;  %v1938_v4 = vld [vmem:[%s290_s25 + $0x8] sm:$0xff]  ;;  %v1942_v6 = vld [vmem:[%s290_s25 + $0x18] sm:$0xff]  ;;  %v322_v15 = vmax.f32 %v1930_v0, %v1932_v1  ;;  %s1804_s18 = smov 1   ;;  %s1805_s19 = smov 4  }
  0x2d   : > { %v299_v7 = vadd.f32 %v1938_v4, %v1934_v2  ;;  %v316_v8 = vmax.f32 %v1934_v2, %v1938_v4  ;;  %v302_v9 = vadd.f32 %v1942_v6, %v1940_v5  ;;  %v1950_v10 = vld [vmem:[%s290_s25 + $0x30] sm:$0xff]  ;;  %v1952_v11 = vld [vmem:[%s290_s25 + $0x38] sm:$0xff]  ;;  %v319_v13 = vmax.f32 %v1940_v5, %v1942_v6  ;;  %s1793_s25 = smov 51   ;;  %s1806_s20 = smov 6  }
  0x2e   : > { %306 = vadd.xlane.f32.xlu1 %v305_v3  ;;  %v308_v12 = vadd.f32 %v1952_v11, %v1950_v10  ;;  %v325_v14 = vmax.f32 %v1950_v10, %v1952_v11  ;;  %s1807_s21 = smov 125   ;;  %s1808_s22 = smov 126  }
  0x2f   : > { %300 = vadd.xlane.f32.xlu0 %v299_v7  ;;  %s1809_s23 = smov 127  }
  0x32   : > { %317 = vmax.xlane.f32.xlu1 %v316_v8 }
  0x33   : > { %303 = vadd.xlane.f32.xlu0 %v302_v9  ;;  %v1983_v9 = vshrl.u32 %v380_v62, 7 }
  0x36   : > { %309 = vadd.xlane.f32.xlu1 %v308_v12 }
  0x37   : > { %320 = vmax.xlane.f32.xlu0 %v319_v13 }
  0x3a   : > { %326 = vmax.xlane.f32.xlu1 %v325_v14 }
  0x3b   : > { %323 = vmax.xlane.f32.xlu0 %v322_v15  ;;  %v1986_v15 = vsub.s32 0, %v1983_v9 }
  0xb7   : > { %v307_v16 = vpop.xlane.xlu1 %306 }
  0xb8   : > { %v301_v17 = vpop.xlane.xlu0 %300  ;;  %v314_v20 = vmul.f32 0.00390625, %v307_v16 }
  0xb9   : > { %v312_v18 = vmul.f32 0.00390625, %v301_v17 }
  0xba   : > { %v343_v29 = vmul.f32 %v330_v24, %v314_v20  ;;  %v334_v20 = vld [vmem:[%s2441_s3 + $0x8] sm:$0xff] }
  0xbb   : > { %v318_v21 = vpop.xlane.xlu1 %317  ;;  %v341_v25 = vmul.f32 %v328_v19, %v312_v18 }
  0xbc   : > { %v304_v22 = vpop.xlane.xlu0 %303  ;;  %v361_v34 = vmul.f32 %v328_v19, %v318_v21  ;;  %v349_v40 = vsel %vm345_vm0, %v343_v29, 0.0  ;;  %v333_v21 = vld [vmem:[%s2441_s3] sm:$0xff] }
  0xbd   : > { %v313_v26 = vmul.f32 0.00390625, %v304_v22  ;;  %v346_v33 = vsel %vm345_vm0, %v341_v25, 0.0 }
  0xbe   : > { %v365_v46 = vsel %vm345_vm0, %v361_v34, 0.0 }
  0xbf   : > { %v310_v27 = vpop.xlane.xlu1 %309  ;;  %v342_v28 = vmul.f32 %v329_v23, %v313_v26 }
  0xc0   : > { %v315_v31 = vmul.f32 0.00390625, %v310_v27  ;;  %v321_v32 = vpop.xlane.xlu0 %320 }
  0xc1   : > { %v347_v35 = vsel %vm345_vm0, %v342_v28, 0.0  ;;  %v362_v36 = vmul.f32 %v329_v23, %v321_v32 }
  0xc2   : > { %v348_v37 = vadd.f32 %v347_v35, %v346_v33  ;;  %v344_v38 = vmul.f32 %v331_v30, %v315_v31  ;;  %v336_v33 = vld [vmem:[%s2441_s3 + $0x18] sm:$0xff] }
  0xc3   : > { %v366_v39 = vsel %vm345_vm0, %v362_v36, 0.0  ;;  %v327_v41 = vpop.xlane.xlu1 %326 }
  0xc4   : > { %v350_v42 = vadd.f32 %v349_v40, %v348_v37  ;;  %v324_v43 = vpop.xlane.xlu0 %323  ;;  %v351_v44 = vsel %vm345_vm0, %v344_v38, 0.0  ;;  %v364_v45 = vmul.f32 %v331_v30, %v327_v41  ;;  %v367_v48 = vadd.f32 %v366_v39, %v365_v46  ;;  %v338_v46 = vld [vmem:[%s2442_s4 + $0x8] sm:$0xff] }
  0xc5   : > { %v363_v47 = vmul.f32 %v330_v24, %v324_v43  ;;  %v335_v24 = vld [vmem:[%s2441_s3 + $0x10] sm:$0xff]  ;;  %v1785_v40 = vmov 0   ;;  %v337_v43 = vld [vmem:[%s2442_s4] sm:$0xff] }
  0xc6   : > { %v352_v49 = vadd.f32 %v351_v44, %v350_v42  ;;  %v370_v51 = vsel %vm345_vm0, %v364_v45, 0.0  ;;  %1621 = vset.pattern.permute.xlu0 %v1785_v40  ;;  %1622 = vset.pattern.permute.xlu1 %v1785_v40 }
  0xc7   : > { %v368_v50 = vsel %vm345_vm0, %v363_v47, 0.0 }
  0xc8   : > { %v369_v52 = vadd.f32 %v368_v50, %v367_v48  ;;  %v353_v53 = vrot.slane %v352_v49, 4 }
  0xca   : > { %v354_v54 = vadd.f32 %v353_v53, %v352_v49  ;;  %v371_v55 = vadd.f32 %v370_v51, %v369_v52  ;;  %v339_v49 = vld [vmem:[%s2442_s4 + $0x10] sm:$0xff] }
  0xcc   : > { %v355_v56 = vrot.slane %v354_v54, 2  ;;  %v372_v57 = vrot.slane %v371_v55, 4 }
  0xce   : > { %v356_v58 = vadd.f32 %v355_v56, %v354_v54  ;;  %v373_v59 = vadd.f32 %v372_v57, %v371_v55 }
  0xd0   : > { %v357_v60 = vrot.slane %v356_v58, 1  ;;  %v374_v61 = vrot.slane %v373_v59, 2 }
  0xd2   : > { %v358_v3 = vadd.f32 %v357_v60, %v356_v58  ;;  %v375_v7 = vadd.f32 %v374_v61, %v373_v59  ;;  %v340_v58 = vld [vmem:[%s2442_s4 + $0x18] sm:$0xff] }
  0xd4   : > { %v376_v8 = vrot.slane %v375_v7, 1  ;;  %v359_v12 = vadd.f32 %v358_v3, %v332_v63 }
  0xd6   : > { %v377_v13 = vadd.f32 %v376_v8, %v375_v7  ;;  %v360_v16 = vmax.f32 %v359_v12, 0.0 }
  0xd8   : > { %v378_v14 = vadd.f32 %v377_v13, %v332_v63  ;;  %v383_v19 = vrot.slane %v360_v16, %v1986_v15 }
  0xda   : > { %v379_v17 = vmax.f32 %v378_v14, 0.0  ;;  %v384_v28 = vmul.f32 %v383_v19, %v333_v21  ;;  %v385_v31 = vmul.f32 %v383_v19, %v334_v20  ;;  %v386_v32 = vmul.f32 %v383_v19, %v335_v24 }
  0xdb   : > { %v387_v37 = vmul.f32 %v383_v19, %v336_v33 }
  0xdc   : > { %v407_v18 = vrot.slane %v379_v17, %v1986_v15  ;;  %v388_v30 = vsel %vm345_vm0, %v384_v28, 0.0  ;;  %v391_v34 = vsel %vm345_vm0, %v385_v31, 0.0  ;;  %v394_v35 = vsel %vm345_vm0, %v386_v32, 0.0  ;;  %v2034_v31 = vld [vmem:[%s2443_s5 + $0x8] sm:$0x3f] }
  0xdd   : > { %v397_v39 = vsel %vm345_vm0, %v387_v37, 0.0  ;;  %v1786_v28 = vmov 1   ;;  %v2446_v32 = vmov 0.0  }
  0xde   : > { %v409_v22 = vmul.f32 %v407_v18, %v334_v20  ;;  %v408_v23 = vmul.f32 %v407_v18, %v333_v21  ;;  %v410_v27 = vmul.f32 %v407_v18, %v335_v24  ;;  %v411_v36 = vmul.f32 %v407_v18, %v336_v33  ;;  %523 = vst [vmem:[#allocation2] sm:$0x3] %v2446_v32 }
  0xdf   : > { %524 = vst [vmem:[#allocation2 + $0x6] sm:$0x3] %v2446_v32  ;;  %v1789_v33 = vmov 3  }
  0xe0   : > { %v415_v25 = vsel %vm345_vm0, %v409_v22, 0.0  ;;  %v412_v26 = vsel %vm345_vm0, %v408_v23, 0.0  ;;  %v418_v29 = vsel %vm345_vm0, %v410_v27, 0.0  ;;  %v421_v38 = vsel %vm345_vm0, %v411_v36, 0.0 }
  0xe1   : > { %416 = vadd.xlane.f32.xlu1 %v415_v25  ;;  %413 = vadd.xlane.f32.xlu0 %v412_v26 }
  0xe5   : > { %419 = vadd.xlane.f32.xlu1 %v418_v29  ;;  %389 = vadd.xlane.f32.xlu0 %v388_v30  ;;  %v2027_v29 = vld [vmem:[%s2443_s5] sm:$0xff]  ;;  %v1787_v30 = vmov 2  }
  0xe9   : > { %392 = vadd.xlane.f32.xlu1 %v391_v34  ;;  %395 = vadd.xlane.f32.xlu0 %v394_v35 }
  0xed   : > { %422 = vadd.xlane.f32.xlu1 %v421_v38  ;;  %398 = vadd.xlane.f32.xlu0 %v397_v39 }
 0x16a   : > { %v417_v41 = vpop.xlane.xlu1 %416  ;;  %v414_v42 = vpop.xlane.xlu0 %413 }
 0x16b   : > { %v424_v47 = vadd.f32 %v414_v42, %v337_v43  ;;  %v425_v51 = vadd.f32 %v417_v41, %v338_v46 }
 0x16e   : > { %v420_v44 = vpop.xlane.xlu1 %419  ;;  %v390_v45 = vpop.xlane.xlu0 %389 }
 0x16f   : > { %v400_v48 = vadd.f32 %v390_v45, %v337_v43  ;;  %v426_v54 = vadd.f32 %v420_v44, %v339_v49 }
 0x171   : > { %v428_v50 = vadd.f32 %v424_v47, %v400_v48 }
 0x172   : > { %v393_v52 = vpop.xlane.xlu1 %392  ;;  %v396_v53 = vpop.xlane.xlu0 %395 }
 0x173   : > { %v1516_v55 = vmul.f32 -1.442695, %v428_v50  ;;  %v401_v56 = vadd.f32 %v393_v52, %v338_v46  ;;  %v402_v57 = vadd.f32 %v396_v53, %v339_v49 }
 0x175   : > { %1668 = vpow2.f32 %v1516_v55  ;;  %v429_v59 = vadd.f32 %v425_v51, %v401_v56  ;;  %v430_v60 = vadd.f32 %v426_v54, %v402_v57  ;;  %v1790_v57 = vmov 1966171168  }
 0x176   : > { %v423_v61 = vpop.xlane.xlu1 %422  ;;  %v399_v63 = vpop.xlane.xlu0 %398 }
 0x177   : > { %v1517_v3 = vmul.f32 -1.442695, %v429_v59  ;;  %v1518_v7 = vmul.f32 -1.442695, %v430_v60  ;;  %v427_v8 = vadd.f32 %v423_v61, %v340_v58  ;;  %v403_v12 = vadd.f32 %v399_v63, %v340_v58 }
 0x178   : > { %v529_v58 = vunpack.c.l.s4 %v1790_v57 }
 0x179   : > { %1670 = vpow2.f32 %v1517_v3  ;;  %v431_v13 = vadd.f32 %v427_v8, %v403_v12 }
 0x17a   : > { %1672 = vpow2.f32 %v1518_v7 }
 0x17b   : > { %v1519_v14 = vmul.f32 -1.442695, %v431_v13  ;;  %v530_v13 = vunpack.c.0.s8 %v529_v58 }
 0x17d   : > { %1674 = vpow2.f32 %v1519_v14 }
 0x182   : > { %v1669_v16 = vpop.eup %1668 }
 0x183   : > { %v444_v17 = vadd.f32 1.0, %v1669_v16 }
 0x185   : > { %1676 = vrcp.f32 %v444_v17 }
 0x186   : > { %v1671_v18 = vpop.eup %1670 }
 0x187   : > { %v1673_v19 = vpop.eup %1672  ;;  %v445_v20 = vadd.f32 1.0, %v1671_v18 }
 0x188   : > { %v446_v21 = vadd.f32 1.0, %v1673_v19 }
 0x189   : > { %1678 = vrcp.f32 %v445_v20 }
 0x18a   : > { %v1675_v22 = vpop.eup %1674  ;;  %1680 = vrcp.f32 %v446_v21 }
 0x18b   : > { %v447_v23 = vadd.f32 1.0, %v1675_v22 }
 0x18d   : > { %1682 = vrcp.f32 %v447_v23  ;;  %v533_v23 = vsub.s32 %v530_v13, %v1983_v9 }
 0x192   : > { %v1677_v24 = vpop.eup %1676 }
 0x193   : > { %458 = vperm.xlu0 %1621, %v1677_v24  }
 0x196   : > { %v1679_v25 = vpop.eup %1678 }
 0x197   : > { %463 = vperm.xlu1 %1622, %v1679_v25   ;;  %v1681_v26 = vpop.eup %1680  ;;  %1624 = vset.pattern.permute.xlu0 %v1786_v28 }
 0x198   : > { %901 = vperm.xlu0 %1624, %v2034_v31  }
 0x19a   : > { %v1683_v27 = vpop.eup %1682 }
 0x19b   : > { %468 = vperm.xlu1 %1622, %v1681_v26  }
 0x19c   : > { %1626 = vset.pattern.permute.xlu0 %v1789_v33 }
 0x19f   : > { %473 = vperm.xlu1 %1622, %v1683_v27  }
 0x1a3   : > { %1623 = vset.pattern.permute.xlu1 %v1786_v28 }
 0x1a4   : > { %897 = vperm.xlu1 %1623, %v2027_v29  }
 0x1a8   : > { %1625 = vset.pattern.permute.xlu1 %v1787_v30 }
 0x1a9   : > { %982 = vperm.xlu1 %1625, %v2027_v29  }
 0x1ad   : > { %986 = vperm.xlu1 %1625, %v2034_v31  }
 0x1b1   : > { %1627 = vset.pattern.permute.xlu1 %v1789_v33  ;;  %v1791_v33 = vmov 1983009808  }
 0x20e   : > { %v459_v35 = vpop.permute.xlu0 %458 }
 0x20f   : > { %v2047_v39 = vmul.f32 %v459_v35, %v1934_v2  ;;  %v2050_v41 = vmul.f32 %v459_v35, %v1938_v4 }
 0x212   : > { %v464_v34 = vpop.permute.xlu1 %463 }
 0x213   : > { %v2041_v36 = vmul.f32 %v464_v34, %v1940_v5  ;;  %v2044_v37 = vmul.f32 %v464_v34, %v1942_v6  ;;  %v573_v34 = vunpack.c.l.s4 %v1791_v33 }
 0x215   : > { %v502_v5 = vadd.f32 %v2041_v36, %v2047_v39  ;;  %v511_v6 = vadd.f32 %v2044_v37, %v2050_v41 }
 0x216   : > { %v469_v38 = vpop.permute.xlu1 %468 }
 0x217   : > { %v2053_v42 = vmul.f32 %v469_v38, %v1930_v0  ;;  %v2056_v43 = vmul.f32 %v469_v38, %v1932_v1 }
 0x219   : > { %v503_v45 = vadd.f32 %v502_v5, %v2053_v42  ;;  %v512_v2 = vadd.f32 %v511_v6, %v2056_v43  ;;  %v484_v1 = vmax.f32 %v2047_v39, %v2053_v42  ;;  %v493_v46 = vmax.f32 %v2050_v41, %v2056_v43 }
 0x21a   : > { %v474_v44 = vpop.permute.xlu1 %473 }
 0x21b   : > { %v2065_v4 = vmul.f32 %v474_v44, %v1950_v10  ;;  %v2068_v0 = vmul.f32 %v474_v44, %v1952_v11  ;;  %v574_v44 = vunpack.c.0.s8 %v573_v34 }
 0x21d   : > { %v485_v47 = vmax.f32 %v2041_v36, %v2065_v4  ;;  %v494_v48 = vmax.f32 %v2044_v37, %v2068_v0  ;;  %v504_v49 = vadd.f32 %v503_v45, %v2065_v4  ;;  %v513_v10 = vadd.f32 %v512_v2, %v2068_v0 }
 0x21e   : > { %v2083_v45 = vsub.s32 %v574_v44, %v1983_v9 }
 0x21f   : > { %v486_v50 = vmax.f32 %v484_v1, %v485_v47  ;;  %v495_v51 = vmax.f32 %v493_v46, %v494_v48  ;;  %v505_v11 = vrot.slane %v504_v49, 4  ;;  %v514_v52 = vrot.slane %v513_v10, 4 }
 0x221   : > { %v487_v53 = vrot.slane %v486_v50, 4  ;;  %v496_v54 = vrot.slane %v495_v51, 4  ;;  %v506_v55 = vadd.f32 %v505_v11, %v504_v49  ;;  %v515_v56 = vadd.f32 %v514_v52, %v513_v10 }
 0x223   : > { %v488_v59 = vmax.f32 %v486_v50, %v487_v53  ;;  %v497_v60 = vmax.f32 %v495_v51, %v496_v54  ;;  %v507_v61 = vrot.slane %v506_v55, 2  ;;  %v516_v63 = vrot.slane %v515_v56, 2 }
 0x225   : > { %v489_v3 = vrot.slane %v488_v59, 2  ;;  %v498_v7 = vrot.slane %v497_v60, 2  ;;  %v508_v8 = vadd.f32 %v507_v61, %v506_v55  ;;  %v517_v12 = vadd.f32 %v516_v63, %v515_v56 }
 0x227   : > { %v490_v14 = vmax.f32 %v488_v59, %v489_v3  ;;  %v499_v16 = vmax.f32 %v497_v60, %v498_v7  ;;  %v509_v17 = vrot.slane %v508_v8, 1  ;;  %v518_v18 = vrot.slane %v517_v12, 1 }
 0x229   : > { %v491_v19 = vrot.slane %v490_v14, 1  ;;  %v500_v20 = vrot.slane %v499_v16, 1  ;;  %v510_v21 = vadd.f32 %v509_v17, %v508_v8  ;;  %v519_v22 = vadd.f32 %v518_v18, %v517_v12 }
 0x22b   : > { %v492_v24 = vmax.f32 %v490_v14, %v491_v19  ;;  %v501_v25 = vmax.f32 %v499_v16, %v500_v20  ;;  %v521_v26 = vmul.f32 0.03125, %v510_v21  ;;  %v522_v27 = vmul.f32 0.03125, %v519_v22 }
 0x22c   : > { %v813_v14 = vand.u32 127, %v380_v62 }
 0x22d   : > { %v527_v28 = vcombine.low %v492_v24, %v501_v25  ;;  %v551_v30 = vcombine.low %v521_v26, %v522_v27 }
 0x22e   : > { %v814_v19 = vadd.s32 128, %v813_v14  ;;  %v2117_v22 = vand.u32 15, %v813_v14 }
 0x22f   : > { %v534_v35 = vrot.slane %v527_v28, %v533_v23  ;;  %v558_v38 = vrot.slane %v551_v30, %v533_v23  ;;  %v1799_v28 = vmov 4  }
 0x230   : > { %v2119_v62 = vand.u32 15, %v814_v19  ;;  %v1025_v24 = vadd.s32 4294967295, %v2117_v22  ;;  %v1253_v30 = vadd.s32 2, %v2117_v22 }
 0x231   : > { %v541_v5 = vrot.slane %v534_v35, %v533_v23  ;;  %v565_v6 = vrot.slane %v558_v38, %v533_v23 }
 0x232   : > { %v1026_v25 = vadd.s32 4294967295, %v2119_v62  ;;  %vm1027_vm2 = vcmp.ge.s32.totalorder %v1025_v24, 0  ;;  %v1254_v33 = vadd.s32 2, %v2119_v62  ;;  %vm1257_vm4 = vcmp.lt.s32.totalorder %v1253_v30, 16 }
 0x233   : > { %548 = vst.msk [vmem:[#allocation2 + $0x2] ss:$2 sm:$0x3] %vm545_vm1, %v541_v5  ;;  %568 = vst.msk [vmem:[#allocation2 + $0x3] ss:$2 sm:$0x3] %vm545_vm1, %v565_v6 }
 0x234   : > { %vm1028_vm3 = vcmp.ge.s32.totalorder %v1026_v25, 0  ;;  %v1524_v38 = vsel %vm1027_vm2, 1.0, %v2446_v32  ;;  %vm1258_vm5 = vcmp.lt.s32.totalorder %v1254_v33, 16  ;;  %v1800_v6 = vmov 6  }
 0x235   : > { %v1525_v5 = vsel %vm1028_vm3, 1.0, %v2446_v32  ;;  %vm699_vm1 = vcmask 23552   ;;  %vm708_vm2 = vcmask 48134   ;;  %vm601_vm3 = vcmask 41984  }
 0x23a   : > { %v637_v2 = vld [vmem:[#allocation2] sm:$0x3f] }
 0x23b   : > { %v569_v1 = vld [vmem:[#allocation2] sm:$0x3f]  ;;  %v646_v46 = vrot.slane %v637_v2, %v2083_v45  ;;  %v639_v3 = vcombine.high %v637_v2, %v637_v2  ;;  %v1638_v2 = vpack.i.bf16 %v1525_v5, %v1524_v38 }
 0x23c   : > { %v578_v47 = vrot.slane %v569_v1, %v2083_v45  ;;  %v672_v48 = vld [vmem:[#allocation2] sm:$0xff]  ;;  %v571_v13 = vcombine.high %v569_v1, %v569_v1  ;;  %v1528_v1 = vsel %vm1257_vm4, 1.0, %v2446_v32  ;;  %vm801_vm4 = vcmask 678912  }
 0x23d   : > { %v710_v49 = vld [vmem:[#allocation2 + $0x2] sm:$0x3f]  ;;  %658 = vrot.lane.b32.xlu0 %v646_v46, %s1792_s24  ;;  %v688_v10 = vrot.slane %v672_v48, %v2083_v45  ;;  %v674_v56 = vcombine.low %v672_v48, %v672_v48  ;;  %v654_v61 = vcombine.low %v646_v46, %v646_v46  ;;  %v653_v18 = vrot.slane %v639_v3, %v2083_v45 }
 0x23e   : > { %587 = vrot.lane.b32.xlu1 %v578_v47, %s1793_s25  ;;  %v719_v50 = vrot.slane %v710_v49, %v2083_v45  ;;  %v743_v9 = vld [vmem:[#allocation2 + $0x2] sm:$0x3f]  ;;  %v586_v55 = vcombine.high %v578_v47, %v578_v47  ;;  %v712_v12 = vcombine.high %v710_v49, %v710_v49  ;;  %v585_v17 = vrot.slane %v571_v13, %v2083_v45 }
 0x23f   : > { %v603_v51 = vld [vmem:[#allocation2] sm:$0x3f]  ;;  %v759_v11 = vrot.slane %v743_v9, %v2083_v45  ;;  %v681_v58 = vrot.slane %v674_v56, %v2083_v45  ;;  %v745_v63 = vcombine.low %v743_v9, %v743_v9  ;;  %v690_v8 = vcombine.low %v688_v10, %v688_v10 }
 0x240   : > { %v619_v52 = vrot.slane %v603_v51, %v2083_v45  ;;  %v776_v53 = vld [vmem:[#allocation2 + $0x2] sm:$0x3f]  ;;  %v605_v57 = vcombine.low %v603_v51, %v603_v51  ;;  %v727_v60 = vcombine.high %v719_v50, %v719_v50  ;;  %v726_v16 = vrot.slane %v712_v12, %v2083_v45 }
 0x241   : > { %697 = vrot.lane.b32.xlu0 %v688_v10, %s1794_s30  ;;  %v785_v54 = vrot.slane %v776_v53, %v2083_v45  ;;  %v752_v7 = vrot.slane %v745_v63, %v2083_v45  ;;  %v655_v21 = vcombine.low %v653_v18, %v653_v18  ;;  %v778_v26 = vcombine.high %v776_v53, %v776_v53  ;;  %v2164_v63 = vpop.permute.xlu0 %901 }
 0x242   : > { %728 = vrot.lane.b32.xlu1 %v719_v50, %s1795_s9  ;;  %v612_v59 = vrot.slane %v605_v57, %v2083_v45  ;;  %v689_v27 = vcombine.low %v681_v58, %v681_v58  ;;  %v1529_v46 = vsel %vm1258_vm5, 1.0, %v2446_v32  ;;  %v1803_v47 = vmov 5  }
 0x243   : > { %v793_v20 = vcombine.low %v785_v54, %v785_v54  ;;  %v760_v34 = vcombine.high %v752_v7, %v752_v7  ;;  %v792_v35 = vrot.slane %v778_v26, %v2083_v45  ;;  %v1648_v45 = vpack.i.bf16 %v1529_v46, %v1528_v1 }
 0x244   : > { %v620_v23 = vcombine.high %v612_v59, %v612_v59  ;;  %v940_v48 = vadd.s32 4294967294, %v2117_v22  ;;  %v941_v49 = vadd.s32 4294967294, %v2119_v62  ;;  %v1168_v10 = vadd.s32 1, %v2117_v22 }
 0x245   : > { %765 = vrot.lane.b32.xlu0 %v759_v11, %s1796_s10  ;;  %v794_v44 = vcombine.low %v792_v35, %v792_v35  ;;  %v1169_v50 = vadd.s32 1, %v2119_v62  ;;  %v1338_v11 = vadd.s32 3, %v2117_v22  ;;  %vm670_vm5 = vcmask 46084  }
 0x246   : > { %625 = vrot.lane.b32.xlu1 %v619_v52, %s1797_s14  ;;  %vm942_vm6 = vcmp.ge.s32.totalorder %v940_v48, 0  ;;  %vm943_vm7 = vcmp.ge.s32.totalorder %v941_v49, 0  ;;  %vm1172_vm8 = vcmp.lt.s32.totalorder %v1168_v10, 16  ;;  %v1339_v52 = vadd.s32 3, %v2119_v62 }
 0x247   : > { %v1522_v9 = vsel %vm942_vm6, 1.0, %v2446_v32  ;;  %v1523_v51 = vsel %vm943_vm7, 1.0, %v2446_v32  ;;  %vm1173_vm9 = vcmp.lt.s32.totalorder %v1169_v50, 16  ;;  %vm1342_vm10 = vcmp.lt.s32.totalorder %v1338_v11, 16 }
 0x248   : > { %v1633_v53 = vpack.i.bf16 %v1523_v51, %v1522_v9  ;;  %vm1343_vm11 = vcmp.lt.s32.totalorder %v1339_v52, 16  ;;  %v1530_v57 = vsel %vm1342_vm10, 1.0, %v2446_v32  ;;  %vm627_vm6 = vcmask 285696  }
 0x249   : > { %797 = vrot.lane.b32.xlu0 %v785_v54, %s1798_s15  ;;  %v1526_v54 = vsel %vm1172_vm8, 1.0, %v2446_v32  ;;  %vm767_vm7 = vcmask 809984   ;;  %vm1014_vm8 = vcmask 15360   ;;  %vm997_vm10 = vcmask 1045520  }
 0x24a   : > { %589 = vrot.lane.b32.xlu1 %v586_v55, %s1793_s25  ;;  %v1527_v55 = vsel %vm1173_vm9, 1.0, %v2446_v32  ;;  %vm1016_vm9 = vcmask 13312  }
 0x24b   : > { %v1643_v56 = vpack.i.bf16 %v1527_v55, %v1526_v54 }
 0x24d   : > { %693 = vrot.lane.b32.xlu0 %v681_v58, %s1794_s30  ;;  %v1531_v58 = vsel %vm1343_vm11, 1.0, %v2446_v32  ;;  %vm1080_vm11 = vcmask 1047576  }
 0x24e   : > { %621 = vrot.lane.b32.xlu1 %v612_v59, %s1797_s14  ;;  %v1653_v59 = vpack.i.bf16 %v1531_v58, %v1530_v57 }
 0x251   : > { %730 = vrot.lane.b32.xlu0 %v727_v60, %s1795_s9 }
 0x252   : > { %656 = vrot.lane.b32.xlu1 %v654_v61, %s1792_s24 }
 0x255   : > { %761 = vrot.lane.b32.xlu0 %v752_v7, %s1796_s10 }
 0x256   : > { %695 = vrot.lane.b32.xlu1 %v690_v8, %s1794_s30 }
 0x259   : > { %591 = vrot.lane.b32.xlu0 %v585_v17, %s1793_s25  ;;  %s1811_s25 = smov 123  }
 0x25a   : > { %732 = vrot.lane.b32.xlu1 %v726_v16, %s1795_s9  ;;  %s1379_s9 = sld [smem:[#allocation4]] }
 0x25d   : > { %660 = vrot.lane.b32.xlu0 %v655_v21, %s1792_s24  ;;  %s1810_s24 = smov 124  }
 0x25e   : > { %795 = vrot.lane.b32.xlu1 %v793_v20, %s1798_s15 }
 0x261   : > { %1067 = vperm.xlu0 %1626, %v2027_v29  }
 0x262   : > { %623 = vrot.lane.b32.xlu1 %v620_v23, %s1797_s14 }
 0x265   : > { %1629 = vset.pattern.permute.xlu0 %v1799_v28 }
 0x266   : > { %691 = vrot.lane.b32.xlu1 %v689_v27, %s1794_s30  ;;  %1130 = vperm.xlu0 %1629, %v2034_v31   ;;  %s1812_s30 = smov 122  }
 0x26a   : > { %763 = vrot.lane.b32.xlu1 %v760_v34, %s1796_s10  ;;  %1631 = vset.pattern.permute.xlu0 %v1800_v6  ;;  %s283_s10 = sand.u32 1, %s1774_s27  }
 0x26b   : > { %1295 = vperm.xlu0 %1631, %v2027_v29   ;;  %s1513_s14 = sshll.u32 %s283_s10, 6 }
 0x26e   : > { %799 = vrot.lane.b32.xlu1 %v794_v44, %s1798_s15  ;;  %s1540_s15 = sshll.u32 %s1880_s6, 10  ;;  %s2398_s6 = scalar_lea.sflag [#allocation7], %s283_s10 }
 0x26f   : > { %1639 = vrot.lane.b32.xlu0 %v1638_v2, %s1801_s16  ;;  %s285_s16 = scalar_lea.vmem [#allocation8], %s1513_s14 }
 0x270   : > { %1658 = vset.pattern.permute.xlu0 %v1785_v40 }
 0x272   : > { %1071 = vperm.xlu1 %1627, %v2034_v31  }
 0x273   : > { %1649 = vrot.lane.b32.xlu0 %v1648_v45, %s1802_s17  ;;  %s1433_s17 = sshll.u32 %s285_s16, 4  ;;  %s2392_s17 = int_to_ptr.vmem [resolvable:$true] %s1433_s17 }
 0x276   : > { %1628 = vset.pattern.permute.xlu1 %v1799_v28 }
 0x277   : > { %1126 = vperm.xlu1 %1628, %v2027_v29   ;;  %850 = vperm.xlu0 %1658, %v2034_v31  }
 0x27b   : > { %1630 = vset.pattern.permute.xlu1 %v1803_v47  ;;  %1660 = vset.pattern.permute.xlu0 %v1800_v6 }
 0x27c   : > { %1210 = vperm.xlu1 %1630, %v2027_v29  }
 0x280   : > { %1214 = vperm.xlu1 %1630, %v2034_v31  }
 0x284   : > { %1632 = vset.pattern.permute.xlu1 %v1800_v6 }
 0x285   : > { %1299 = vperm.xlu1 %1632, %v2034_v31   ;;  %v2158_v31 = vpop.permute.xlu1 %897 }
 0x289   : > { %1634 = vrot.lane.b32.xlu1 %v1633_v53, %s1804_s18  ;;  %v2160_v60 = vpop.permute.xlu1 %982 }
 0x28a   : > { %1659 = vset.pattern.permute.xlu1 %v1785_v40 }
 0x28d   : > { %1644 = vrot.lane.b32.xlu1 %v1643_v56, %s1805_s19  ;;  %v2162_v61 = vpop.permute.xlu1 %986 }
 0x291   : > { %1654 = vrot.lane.b32.xlu1 %v1653_v59, %s1806_s20  ;;  %s2390_s20 = scalar_lea.hbm %s2445_s7, %s1540_s15 }
 0x295   : > { %845 = vperm.xlu1 %1659, %v2027_v29  }
 0x2af   : > { %v659_v7 = vpop.permute.xlu0 %658 }
 0x2b0   : > { %v588_v3 = vpop.permute.xlu1 %587 }
 0x2b3   : > { %v698_v12 = vpop.permute.xlu0 %697 }
 0x2b4   : > { %v729_v8 = vpop.permute.xlu1 %728 }
 0x2b7   : > { %v766_v13 = vpop.permute.xlu0 %765 }
 0x2b8   : > { %v626_v40 = vpop.permute.xlu1 %625  ;;  %775 = vst.msk [vmem:[#allocation3 + $0x28] sm:$0xc] %vm635_vm12, %v766_v13 }
 0x2b9   : > { %636 = vst.msk [vmem:[#allocation3 + $0x10] sm:$0xc] %vm635_vm12, %v626_v40  ;;  %vm857_vm12 = vcmask 1045504  }
 0x2bb   : > { %v798_v29 = vpop.permute.xlu0 %797 }
 0x2bc   : > { %v590_v14 = vpop.permute.xlu1 %589 }
 0x2bd   : > { %v594_v16 = vsel %vm593_vm13, %v588_v3, %v590_v14 }
 0x2be   : > { %599 = vst [vmem:[#allocation3] sm:$0x3] %v594_v16 }
 0x2bf   : > { %v694_v18 = vpop.permute.xlu0 %693 }
 0x2c0   : > { %v622_v17 = vpop.permute.xlu1 %621 }
 0x2c3   : > { %v731_v20 = vpop.permute.xlu0 %730 }
 0x2c4   : > { %v657_v19 = vpop.permute.xlu1 %656  ;;  %v735_v23 = vsel %vm734_vm15, %v729_v8, %v731_v20 }
 0x2c5   : > { %v663_v21 = vsel %vm662_vm14, %v657_v19, %v659_v7  ;;  %740 = vst [vmem:[#allocation3 + $0x18] sm:$0x3] %v735_v23 }
 0x2c6   : > { %668 = vst [vmem:[#allocation3] sm:$0x30] %v663_v21 }
 0x2c7   : > { %v762_v25 = vpop.permute.xlu0 %761 }
 0x2c8   : > { %v696_v24 = vpop.permute.xlu1 %695 }
 0x2c9   : > { %v701_v26 = vsel %vm699_vm1, %v694_v18, %v696_v24  ;;  %v702_v27 = vsel %vm699_vm1, %v696_v24, %v698_v12 }
 0x2ca   : > { %707 = vst [vmem:[#allocation3 + $0x8] sm:$0xc0] %v701_v26  ;;  %709 = vst.msk [vmem:[#allocation3 + $0x10] sm:$0xc0] %vm708_vm2, %v702_v27  ;;  %vm1141_vm2 = vcmask 1045536  }
 0x2cb   : > { %v592_v30 = vpop.permute.xlu0 %591 }
 0x2cc   : > { %v733_v28 = vpop.permute.xlu1 %732  ;;  %v595_v34 = vsel %vm593_vm13, %v590_v14, %v592_v30  ;;  %602 = vst.msk [vmem:[#allocation3 + $0x10] sm:$0x3] %vm601_vm3, %v592_v30  ;;  %vm929_vm13 = vcmask 7168  }
 0x2cd   : > { %v736_v33 = vsel %vm734_vm15, %v731_v20, %v733_v28  ;;  %742 = vst.msk [vmem:[#allocation3 + $0x28] sm:$0x3] %vm601_vm3, %v733_v28  ;;  %600 = vst [vmem:[#allocation3 + $0x8] sm:$0x3] %v595_v34  ;;  %vm910_vm15 = vcmask 1047560   ;;  %vm912_vm3 = vcmask 1045512  }
 0x2ce   : > { %741 = vst [vmem:[#allocation3 + $0x20] sm:$0x3] %v736_v33 }
 0x2cf   : > { %v661_v38 = vpop.permute.xlu0 %660 }
 0x2d0   : > { %v796_v35 = vpop.permute.xlu1 %795  ;;  %v664_v6 = vsel %vm662_vm14, %v659_v7, %v661_v38  ;;  %671 = vst.msk [vmem:[#allocation3 + $0x10] sm:$0x30] %vm670_vm5, %v661_v38  ;;  %vm995_vm14 = vcmask 1047568  }
 0x2d1   : > { %v802_v5 = vsel %vm801_vm4, %v796_v35, %v798_v29  ;;  %669 = vst [vmem:[#allocation3 + $0x8] sm:$0x30] %v664_v6 }
 0x2d2   : > { %807 = vst [vmem:[#allocation3 + $0x18] sm:$0x30] %v802_v5 }
 0x2d4   : > { %v624_v44 = vpop.permute.xlu1 %623 }
 0x2d5   : > { %v628_v2 = vsel %vm627_vm6, %v622_v17, %v624_v44  ;;  %v629_v1 = vsel %vm627_vm6, %v624_v44, %v626_v40  ;;  %vm1327_vm6 = vcmask 48128  }
 0x2d6   : > { %633 = vst [vmem:[#allocation3] sm:$0xc] %v628_v2  ;;  %634 = vst [vmem:[#allocation3 + $0x8] sm:$0xc] %v629_v1 }
 0x2d7   : > { %v2179_v51 = vld [vmem:[#allocation3 + $0x10] sm:$0xff] }
 0x2d8   : > { %v692_v46 = vpop.permute.xlu1 %691  ;;  %v991_v54 = vmul.f32 %v2160_v60, %v2179_v51  ;;  %v906_v12 = vmul.f32 %v2158_v31, %v2179_v51 }
 0x2d9   : > { %v700_v45 = vsel %vm699_vm1, %v692_v46, %v694_v18 }
 0x2da   : > { %706 = vst [vmem:[#allocation3] sm:$0xc0] %v700_v45  ;;  %v1015_v59 = vsel %vm1014_vm8, %v991_v54, 0.0  ;;  %v930_v30 = vsel %vm929_vm13, %v906_v12, 0.0 }
 0x2dc   : > { %v764_v47 = vpop.permute.xlu1 %763  ;;  %v1068_v9 = vpop.permute.xlu0 %1067 }
 0x2dd   : > { %v768_v48 = vsel %vm767_vm7, %v762_v25, %v764_v47  ;;  %v769_v49 = vsel %vm767_vm7, %v764_v47, %v766_v13  ;;  %v2200_v40 = vld [vmem:[#allocation3 + $0x8] sm:$0xff]  ;;  %v1076_v14 = vmul.f32 %v1068_v9, %v2179_v51  ;;  %vm1082_vm7 = vcmask 1045528  }
 0x2de   : > { %773 = vst [vmem:[#allocation3 + $0x18] sm:$0xc] %v768_v48  ;;  %774 = vst [vmem:[#allocation3 + $0x20] sm:$0xc] %v769_v49  ;;  %v1075_v26 = vmul.f32 %v1068_v9, %v2200_v40  ;;  %v2221_v38 = vmul.f32 %v2158_v31, %v2200_v40 }
 0x2df   : > { %v1099_v33 = vsel %vm699_vm1, %v1076_v14, 0.0  ;;  %vm1242_vm1 = vcmask 39936  }
 0x2e0   : > { %v800_v10 = vpop.permute.xlu1 %799 }
 0x2e1   : > { %v803_v50 = vsel %vm801_vm4, %v798_v29, %v800_v10  ;;  %809 = vst.msk [vmem:[#allocation3 + $0x28] sm:$0x30] %vm670_vm5, %v800_v10  ;;  %v2183_v52 = vld [vmem:[#allocation3] sm:$0xff]  ;;  %v2185_v53 = vpop.permute.xlu0 %1130  ;;  %vm1159_vm4 = vcmask 29696   ;;  %vm1308_vm5 = vcmask 1047600  }
 0x2e2   : > { %808 = vst [vmem:[#allocation3 + $0x20] sm:$0x30] %v803_v50  ;;  %v989_v58 = vmul.f32 %v2160_v60, %v2183_v52  ;;  %v1074_v13 = vmul.f32 %v1068_v9, %v2183_v52  ;;  %v904_v1 = vmul.f32 %v2158_v31, %v2183_v52 }
 0x2e4   : > { %v996_v18 = vsel %vm995_vm14, %v989_v58, 0.0  ;;  %v1081_v5 = vsel %vm1080_vm11, %v1074_v13, 0.0  ;;  %vm1244_vm14 = vcmask 37888   ;;  %vm1139_vm11 = vcmask 1047584  }
 0x2e5   : > { %v2181_v11 = vld [vmem:[#allocation3 + $0x18] sm:$0x3f] }
 0x2e6   : > { %v992_v56 = vmul.f32 %v2162_v61, %v2181_v11  ;;  %v1296_v16 = vpop.permute.xlu0 %1295  ;;  %v907_v28 = vmul.f32 %v2164_v63, %v2181_v11  ;;  %v1136_v46 = vmul.f32 %v2185_v53, %v2181_v11 }
 0x2e7   : > { %v1302_v50 = vmul.f32 %v1296_v16, %v2183_v52  ;;  %v1304_v9 = vmul.f32 %v1296_v16, %v2179_v51 }
 0x2e8   : > { %v2189_v55 = vld [vmem:[#allocation3 + $0x28] sm:$0x3f]  ;;  %v998_v7 = vsel %vm997_vm10, %v992_v56, 0.0  ;;  %vm931_vm10 = vcmask 5120   ;;  %v913_v31 = vsel %vm912_vm3, %v907_v28, 0.0  ;;  %v2246_v12 = vsel %vm1141_vm2, %v1136_v46, 0.0 }
 0x2e9   : > { %v994_v57 = vmul.f32 %v2162_v61, %v2189_v55  ;;  %v2204_v29 = vld [vmem:[#allocation3 + $0x20] sm:$0x3f]  ;;  %v999_v23 = vadd.f32 %v998_v7, %v996_v18  ;;  %v909_v25 = vmul.f32 %v2164_v63, %v2189_v55  ;;  %v1138_v10 = vmul.f32 %v2185_v53, %v2189_v55 }
 0x2ea   : > { %v2229_v47 = vpop.permute.xlu0 %1639  ;;  %v1137_v54 = vmul.f32 %v2185_v53, %v2204_v29  ;;  %vm1223_vm2 = vcmask 1047592   ;;  %vm1310_vm3 = vcmask 1045552  }
 0x2eb   : > { %v1017_v3 = vsel %vm1016_vm9, %v994_v57, 0.0  ;;  %vm1100_vm9 = vcmask 21504   ;;  %v1000_v45 = vrot.slane %v999_v23, 4  ;;  %v932_v49 = vsel %vm931_vm10, %v909_v25, 0.0 }
 0x2ec   : > { %v1018_v8 = vadd.f32 %v1017_v3, %v1015_v59  ;;  %v911_v3 = vsel %vm910_vm15, %v904_v1, 0.0  ;;  %v933_v7 = vadd.f32 %v932_v49, %v930_v30  ;;  %v1160_v18 = vsel %vm1159_vm4, %v1138_v10, 0.0 }
 0x2ed   : > { %v1072_v17 = vpop.permute.xlu1 %1071  ;;  %v1001_v13 = vadd.f32 %v1000_v45, %v999_v23  ;;  %v2250_v53 = vadd.f32 %v913_v31, %v911_v3  ;;  %vm1225_vm15 = vcmask 1045544   ;;  %vm1329_vm4 = vcmask 46080  }
 0x2ee   : > { %v1019_v19 = vrot.slane %v1018_v8, 4  ;;  %v1077_v20 = vmul.f32 %v1072_v17, %v2181_v11  ;;  %v1078_v21 = vmul.f32 %v1072_v17, %v2204_v29  ;;  %v1079_v24 = vmul.f32 %v1072_v17, %v2189_v55  ;;  %v2263_v25 = vpop.permute.xlu0 %1649 }
 0x2ef   : > { %v934_v30 = vrot.slane %v933_v7, 4 }
 0x2f0   : > { %v1091_v27 = vsel %vm857_vm12, %v1078_v21, 0.0  ;;  %v1020_v34 = vadd.f32 %v1019_v19, %v1018_v8  ;;  %v1101_v35 = vsel %vm1100_vm9, %v1079_v24, 0.0  ;;  %v1083_v6 = vsel %vm1082_vm7, %v1077_v20, 0.0 }
 0x2f1   : > { %v1102_v44 = vadd.f32 %v1101_v35, %v1099_v33  ;;  %v1092_v48 = vadd.f32 %v1091_v27, %v1075_v26  ;;  %v1084_v57 = vadd.f32 %v1083_v6, %v1081_v5  ;;  %v2243_v8 = vmul.f32 %v2160_v60, %v2200_v40 }
 0x2f2   : > { %v1127_v2 = vpop.permute.xlu1 %1126  ;;  %v1021_v56 = vrot.slane %v1020_v34, 2  ;;  %v2254_v19 = vmul.f32 %v1296_v16, %v2200_v40  ;;  %v2257_v20 = vsel %vm1308_vm5, %v1302_v50, 0.0  ;;  %v2260_v60 = vsel %vm1327_vm6, %v1304_v9, 0.0 }
 0x2f3   : > { %v1135_v58 = vmul.f32 %v1127_v2, %v2179_v51  ;;  %v1103_v59 = vrot.slane %v1102_v44, 4  ;;  %v1093_v14 = vrot.slane %v1092_v48, 4  ;;  %v1150_v21 = vsel %vm857_vm12, %v1137_v54, 0.0 }
 0x2f4   : > { %v1022_v24 = vadd.f32 %v1021_v56, %v1020_v34  ;;  %v1085_v23 = vrot.slane %v1084_v57, 4  ;;  %v1002_v33 = vrot.slane %v1001_v13, 2  ;;  %v915_v6 = vrot.slane %v2250_v53, 4  ;;  %v851_v56 = vpop.permute.xlu0 %850 }
 0x2f5   : > { %v1158_v26 = vsel %vm345_vm0, %v1135_v58, 0.0  ;;  %v1104_v28 = vadd.f32 %v1103_v59, %v1102_v44  ;;  %v1094_v5 = vadd.f32 %v1093_v14, %v1092_v48  ;;  %v908_v34 = vmul.f32 %v2164_v63, %v2204_v29 }
 0x2f6   : > { %v1133_v1 = vmul.f32 %v1127_v2, %v2183_v52  ;;  %v1161_v46 = vadd.f32 %v1160_v18, %v1158_v26  ;;  %v1023_v10 = vrot.slane %v1022_v24, 1  ;;  %v1086_v50 = vadd.f32 %v1085_v23, %v1084_v57 }
 0x2f7   : > { %v2248_v17 = vpop.permute.xlu1 %1210  ;;  %v1105_v49 = vrot.slane %v1104_v28, 2  ;;  %v1095_v44 = vrot.slane %v1094_v5, 2  ;;  %v935_v54 = vadd.f32 %v934_v30, %v933_v7  ;;  %v2279_v3 = vsel %vm857_vm12, %v908_v34, 0.0 }
 0x2f8   : > { %v1219_v16 = vmul.f32 %v2248_v17, %v2179_v51  ;;  %v1134_v51 = vmul.f32 %v1127_v2, %v2200_v40  ;;  %v1162_v14 = vrot.slane %v1161_v46, 4  ;;  %v1087_v23 = vrot.slane %v1086_v50, 2 }
 0x2f9   : > { %v1106_v31 = vadd.f32 %v1105_v49, %v1104_v28  ;;  %v1096_v59 = vadd.f32 %v1095_v44, %v1094_v5  ;;  %v1024_v26 = vadd.f32 %v1023_v10, %v1022_v24  ;;  %v841_v28 = vld [vmem:[#allocation3 + $0x18] sm:$0x3f]  ;;  %v842_v49 = vld [vmem:[#allocation3 + $0x20] sm:$0x3f]  ;;  %v936_v34 = vrot.slane %v935_v54, 2 }
 0x2fa   : > { %v1243_v9 = vsel %vm1242_vm1, %v1219_v16, 0.0  ;;  %v1140_v16 = vsel %vm1139_vm11, %v1133_v1, 0.0  ;;  %v1151_v7 = vadd.f32 %v1150_v21, %v1134_v51  ;;  %v855_v5 = vmul.f32 %v851_v56, %v841_v28 }
 0x2fb   : > { %v1215_v35 = vpop.permute.xlu1 %1214  ;;  %v1107_v57 = vrot.slane %v1106_v31, 1  ;;  %v1097_v30 = vrot.slane %v1096_v59, 1  ;;  %v1143_v27 = vadd.f32 %v2246_v12, %v1140_v16  ;;  %v1163_v24 = vadd.f32 %v1162_v14, %v1161_v46 }
 0x2fc   : > { %v1222_v45 = vmul.f32 %v1215_v35, %v2189_v55  ;;  %v1221_v2 = vmul.f32 %v1215_v35, %v2204_v29  ;;  %v1088_v21 = vadd.f32 %v1087_v23, %v1086_v50  ;;  %v1152_v51 = vrot.slane %v1151_v7, 4 }
 0x2fd   : > { %v1108_v44 = vadd.f32 %v1107_v57, %v1106_v31  ;;  %v1098_v63 = vadd.f32 %v1097_v30, %v1096_v59  ;;  %v1217_v31 = vmul.f32 %v2248_v17, %v2183_v52  ;;  %v937_v59 = vadd.f32 %v936_v34, %v935_v54 }
 0x2fe   : > { %v1245_v48 = vsel %vm1244_vm14, %v1222_v45, 0.0  ;;  %v2283_v45 = vadd.f32 %v1002_v33, %v1001_v13  ;;  %v1234_v1 = vsel %vm857_vm12, %v1221_v2, 0.0  ;;  %v2451_v33 = vunpack.i.h.bf16 %v2229_v47 }
 0x2ff   : > { %v1246_v58 = vadd.f32 %v1245_v48, %v1243_v9  ;;  %v856_v9 = vmul.f32 %v851_v56, %v842_v49  ;;  %v1220_v48 = vmul.f32 %v1215_v35, %v2181_v11  ;;  %1116 = vrot.lane.b32.xlu1 %v1108_v44, %s1807_s21  ;;  %v1218_v35 = vmul.f32 %v2248_v17, %v2200_v40 }
 0x300   : > { %v1300_v18 = vpop.permute.xlu1 %1299  ;;  %v1049_v10 = vmul.f32 %v2451_v33, %v1024_v26  ;;  %1114 = vrot.lane.b32.xlu0 %v1098_v63, %s1807_s21  ;;  %v1089_v46 = vrot.slane %v1088_v21, 1  ;;  %v916_v56 = vadd.f32 %v915_v6, %v2250_v53  ;;  %v938_v16 = vrot.slane %v937_v59, 1 }
 0x301   : > { %v1247_v32 = vrot.slane %v1246_v58, 4  ;;  %v1305_v12 = vmul.f32 %v1300_v18, %v2181_v11  ;;  %v1226_v50 = vsel %vm1225_vm15, %v1220_v48, 0.0  ;;  %v1235_v14 = vadd.f32 %v1234_v1, %v1218_v35 }
 0x302   : > { %v1306_v57 = vmul.f32 %v1300_v18, %v2204_v29  ;;  %v1090_v23 = vadd.f32 %v1089_v46, %v1088_v21  ;;  %v1164_v17 = vrot.slane %v1163_v24, 2  ;;  %v1144_v63 = vrot.slane %v1143_v27, 4 }
 0x303   : > { %v1248_v2 = vadd.f32 %v1247_v32, %v1246_v58  ;;  %v858_v11 = vsel %vm857_vm12, %v855_v5, 0.0  ;;  %v866_v30 = vsel %vm857_vm12, %v856_v9, 0.0  ;;  %v1307_v53 = vmul.f32 %v1300_v18, %v2189_v55 }
 0x304   : > { %v2288_v13 = vpop.permute.xlu1 %1634  ;;  %1057 = vrot.lane.b32.xlu0 %v1049_v10, %s1808_s22  ;;  %v1224_v32 = vsel %vm1223_vm2, %v1217_v31, 0.0  ;;  %v1311_v6 = vsel %vm1310_vm3, %v1305_v12, 0.0  ;;  %1112 = vrot.lane.b32.xlu1 %v1090_v23, %s1807_s21  ;;  %v917_v54 = vrot.slane %v916_v56, 2  ;;  %v939_v58 = vadd.f32 %v938_v16, %v937_v59  ;;  %s1718_s21 = scalar_lea.vmem %s2392_s17, 1024 }
 0x305   : > { %v1637_v26 = vunpack.i.h.bf16 %v2288_v13  ;;  %v1227_v49 = vadd.f32 %v1226_v50, %v1224_v32  ;;  %v1236_v44 = vrot.slane %v1235_v14, 4  ;;  %v1165_v34 = vadd.f32 %v1164_v17, %v1163_v24  ;;  %p1719_p9 = scmp.ne.s32.totalorder %s2392_s17, %s1718_s21 }
 0x306   : > { %v1249_v48 = vrot.slane %v1248_v2, 2  ;;  %v2309_v1 = vadd.f32 %v1152_v51, %v1151_v7  ;;  %v1319_v5 = vsel %vm857_vm12, %v1306_v57, 0.0  ;;  %v922_v9 = vadd.f32 %v2279_v3, %v2221_v38 }
 0x307   : > { %v964_v55 = vmul.f32 %v1637_v26, %v939_v58  ;;  %v1312_v21 = vadd.f32 %v1311_v6, %v2257_v20  ;;  %v1330_v33 = vsel %vm1329_vm4, %v1307_v53, 0.0  ;;  %v1166_v24 = vrot.slane %v1165_v34, 1  ;;  %p1720_p10 = pnand %p1719_p9, %p1897_p5 }
 0x308   : > { %v2301_v28 = vpop.permute.xlu1 %1644  ;;  %v1145_v31 = vadd.f32 %v1144_v63, %v1143_v27  ;;  %v918_v7 = vadd.f32 %v917_v54, %v916_v56  ;;  %v1250_v51 = vadd.f32 %v1249_v48, %v1248_v2  ;;  %v923_v35 = vrot.slane %v922_v9, 4 }
 0x309   : > { %v1647_v10 = vunpack.i.h.bf16 %v2301_v28  ;;  %972 = vrot.lane.b32.xlu1 %v964_v55, %s1809_s23  ;;  %v1228_v12 = vrot.slane %v1227_v49, 4  ;;  %v1237_v46 = vadd.f32 %v1236_v44, %v1235_v14  ;;  %v1167_v59 = vadd.f32 %v1166_v24, %v1165_v34  ;;  %p1721_p12 = pneg %p1720_p10 }
 0x30a   : > { %v993_v38 = vmul.f32 %v2162_v61, %v2204_v29  ;;  %v1320_v20 = vadd.f32 %v1319_v5, %v2254_v19  ;;  %v1331_v3 = vadd.f32 %v1330_v33, %v2260_v60  ;;  %v1251_v50 = vrot.slane %v1250_v51, 1 }
 0x30b   : > { %v924_v23 = vadd.f32 %v923_v35, %v922_v9  ;;  %v1313_v27 = vrot.slane %v1312_v21, 4  ;;  %v1192_v56 = vmul.f32 %v1647_v10, %v1167_v59  ;;  %v919_v14 = vrot.slane %v918_v7, 1 }
 0x30c   : > { %v2314_v18 = vpop.permute.xlu1 %1654  ;;  %v1252_v17 = vadd.f32 %v1251_v50, %v1250_v51  ;;  %v1006_v61 = vsel %vm857_vm12, %v993_v38, 0.0  ;;  %v1636_v29 = vunpack.i.l.bf16 %v2288_v13  ;;  %v1146_v32 = vrot.slane %v1145_v31, 2 }
 0x30d   : > { %v925_v63 = vrot.slane %v924_v23, 2  ;;  %1200 = vrot.lane.b32.xlu0 %v1192_v56, %s1810_s24  ;;  %v1007_v53 = vadd.f32 %v1006_v61, %v2243_v8  ;;  %v1229_v58 = vadd.f32 %v1228_v12, %v1227_v49  ;;  %v1321_v44 = vrot.slane %v1320_v20, 4 }
 0x30e   : > { %v1332_v34 = vrot.slane %v1331_v3, 4  ;;  %v1314_v5 = vadd.f32 %v1313_v27, %v1312_v21  ;;  %v920_v55 = vadd.f32 %v919_v14, %v918_v7  ;;  %v1641_v8 = vunpack.i.l.bf16 %v2229_v47 }
 0x30f   : > { %v926_v54 = vadd.f32 %v925_v63, %v924_v23  ;;  %v1008_v48 = vrot.slane %v1007_v53, 4  ;;  %v1154_v9 = vrot.slane %v2309_v1, 2  ;;  %v958_v33 = vsel %vm929_vm13, %v1636_v29, %v1637_v26 }
 0x310   : > { %v846_v57 = vpop.permute.xlu1 %845  ;;  %v962_v51 = vmul.f32 %v1636_v29, %v920_v55  ;;  %v1147_v35 = vadd.f32 %v1146_v32, %v1145_v31  ;;  %v1322_v7 = vadd.f32 %v1321_v44, %v1320_v20  ;;  %v1333_v12 = vadd.f32 %v1332_v34, %v1331_v3 }
 0x311   : > { %v853_v2 = vmul.f32 %v2183_v52, %v846_v57  ;;  %v854_v16 = vmul.f32 %v2200_v40, %v846_v57  ;;  %v1004_v52 = vrot.slane %v2283_v45, 1  ;;  %v2452_v40 = vunpack.i.h.bf16 %v2263_v25 }
 0x312   : > { %v1009_v24 = vadd.f32 %v1008_v48, %v1007_v53  ;;  %v1230_v38 = vrot.slane %v1229_v58, 2  ;;  %v1315_v50 = vrot.slane %v1314_v5, 2  ;;  %v1155_v13 = vadd.f32 %v1154_v9, %v2309_v1 }
 0x313   : > { %v2333_v19 = vadd.f32 %v858_v11, %v853_v2  ;;  %v2335_v60 = vadd.f32 %v866_v30, %v854_v16  ;;  %v1277_v6 = vmul.f32 %v2452_v40, %v1252_v17  ;;  %v927_v11 = vrot.slane %v926_v54, 1 }
 0x314   : > { %v1238_v30 = vrot.slane %v1237_v46, 2  ;;  %v1005_v49 = vadd.f32 %v1004_v52, %v2283_v45  ;;  %v1010_v59 = vrot.slane %v1009_v24, 2  ;;  %v1148_v26 = vrot.slane %v1147_v35, 1 }
 0x315   : > { %1285 = vrot.lane.b32.xlu1 %v1277_v6, %s1811_s25  ;;  %v928_v21 = vadd.f32 %v927_v11, %v926_v54  ;;  %v1334_v45 = vrot.slane %v1333_v12, 2  ;;  %v1231_v31 = vadd.f32 %v1230_v38, %v1229_v58  ;;  %v1323_v16 = vrot.slane %v1322_v7, 2 }
 0x316   : > { %v1239_v23 = vadd.f32 %v1238_v30, %v1237_v46  ;;  %v1011_v27 = vadd.f32 %v1010_v59, %v1009_v24  ;;  %v1047_v56 = vmul.f32 %v1641_v8, %v1005_v49  ;;  %v1646_v20 = vunpack.i.l.bf16 %v2301_v28 }
 0x317   : > { %v963_v57 = vmul.f32 %v958_v33, %v928_v21  ;;  %v1316_v3 = vadd.f32 %v1315_v50, %v1314_v5  ;;  %v2453_v14 = vunpack.i.h.bf16 %v2229_v47  ;;  %v1651_v46 = vunpack.i.l.bf16 %v2263_v25 }
 0x318   : > { %v1012_v2 = vrot.slane %v1011_v27, 1  ;;  %v1240_v63 = vrot.slane %v1239_v23, 1  ;;  %v1156_v1 = vrot.slane %v1155_v13, 1  ;;  %v1149_v29 = vadd.f32 %v1148_v26, %v1147_v35 }
 0x319   : > { %968 = vrot.lane.b32.xlu1 %v962_v51, %s1809_s23  ;;  %970 = vrot.lane.b32.xlu0 %v963_v57, %s1809_s23  ;;  %v1043_v17 = vsel %vm1014_vm8, %v1641_v8, %v2453_v14  ;;  %v1335_v53 = vadd.f32 %v1334_v45, %v1333_v12  ;;  %v1232_v32 = vrot.slane %v1231_v31, 1  ;;  %v1324_v40 = vadd.f32 %v1323_v16, %v1322_v7 }
 0x31a   : > { %v1013_v61 = vadd.f32 %v1012_v2, %v1011_v27  ;;  %v1190_v6 = vmul.f32 %v1646_v20, %v1149_v29  ;;  %v1317_v54 = vrot.slane %v1316_v3, 1  ;;  %v1186_v47 = vsel %vm345_vm0, %v1646_v20, %v1647_v10 }
 0x31b   : > { %v1241_v58 = vadd.f32 %v1240_v63, %v1239_v23  ;;  %v1157_v44 = vadd.f32 %v1156_v1, %v1155_v13  ;;  %v2454_v34 = vunpack.i.h.bf16 %v2263_v25  ;;  %v1657_v5 = vunpack.i.h.bf16 %v2314_v18 }
 0x31c   : > { %v1048_v52 = vmul.f32 %v1043_v17, %v1013_v61  ;;  %v1233_v11 = vadd.f32 %v1232_v32, %v1231_v31  ;;  %v1325_v30 = vrot.slane %v1324_v40, 1  ;;  %v1656_v8 = vunpack.i.l.bf16 %v2314_v18 }
 0x31d   : > { %1053 = vrot.lane.b32.xlu0 %v1047_v56, %s1808_s22  ;;  %v1271_v48 = vsel %vm1242_vm1, %v1651_v46, %v2454_v34  ;;  %v1191_v55 = vmul.f32 %v1186_v47, %v1157_v44  ;;  %v1318_v28 = vadd.f32 %v1317_v54, %v1316_v3  ;;  %v1336_v9 = vrot.slane %v1335_v53, 1 }
 0x31e   : > { %1055 = vrot.lane.b32.xlu1 %v1048_v52, %s1808_s22  ;;  %v1276_v10 = vmul.f32 %v1271_v48, %v1241_v58  ;;  %v1275_v33 = vmul.f32 %v1651_v46, %v1233_v11  ;;  %v1326_v25 = vadd.f32 %v1325_v30, %v1324_v40  ;;  %v1356_v51 = vsel %vm1327_vm6, %v1656_v8, %v1657_v5  ;;  %s1813_s22 = smov [#allocation8]  }
 0x31f   : > { %v1337_v24 = vadd.f32 %v1336_v9, %v1335_v53  ;;  %v1360_v49 = vmul.f32 %v1656_v8, %v1318_v28  ;;  %v860_v18 = vrot.slane %v2333_v19, 4  ;;  %v868_v7 = vrot.slane %v2335_v60, 4  ;;  %s1722_s23 = sshll.u32 %s1813_s22, 4  ;;  %s1723_s23 = int_to_ptr.vmem [resolvable:$false] %s1722_s23 }
 0x320   : > { %v1361_v35 = vmul.f32 %v1356_v51, %v1326_v25  ;;  %v875_v16 = vadd.s32 4294967293, %v2119_v62  ;;  %v874_v20 = vadd.s32 4294967293, %v2117_v22  ;;  %vm974_vm12 = vcmask 1039360   ;;  %p1725_p13 = scmp.lt.s32.totalorder %s2392_s17, %s1723_s23 }
 0x321   : > { %1196 = vrot.lane.b32.xlu0 %v1190_v6, %s1810_s24  ;;  %v1362_v21 = vmul.f32 %v1657_v5, %v1337_v24  ;;  %v861_v38 = vadd.f32 %v860_v18, %v2333_v19  ;;  %v869_v50 = vadd.f32 %v868_v7, %v2335_v60  ;;  %v2455_v46 = vmov 0.0  }
 0x322   : > { %1198 = vrot.lane.b32.xlu1 %v1191_v55, %s1810_s24  ;;  %vm877_vm0 = vcmp.ge.s32.totalorder %v875_v16, 0  ;;  %vm876_vm8 = vcmp.ge.s32.totalorder %v874_v20, 0  ;;  %vm1059_vm13 = vcmask 1031168   ;;  %vm1118_vm5 = vcmask 1022976   ;;  %s1724_s24 = scalar_lea.vmem %s1723_s23, 2048 }
 0x323   : > { %v862_v23 = vrot.slane %v861_v38, 2  ;;  %v870_v27 = vrot.slane %v869_v50, 2  ;;  %v1521_v61 = vsel %vm877_vm0, 1.0, %v2455_v46  ;;  %v1520_v1 = vsel %vm876_vm8, 1.0, %v2455_v46  ;;  %p1726_p0 = scmp.lt.s32.totalorder %s1724_s24, %s1718_s21 }
 0x324   : > { %vm1202_vm6 = vcmask 1014784   ;;  %vm1287_vm7 = vcmask 1006592   ;;  %vm1372_vm9 = vcmask 998400   ;;  %v1380_v7 = vstv %s1379_s9 }
 0x325   : > { %1283 = vrot.lane.b32.xlu0 %v1276_v10, %s1811_s25  ;;  %v863_v26 = vadd.f32 %v862_v23, %v861_v38  ;;  %v871_v45 = vadd.f32 %v870_v27, %v869_v50  ;;  %p1727_p1 = por %p1726_p0, %p1725_p13 }
 0x326   : > { %1281 = vrot.lane.b32.xlu1 %v1275_v33, %s1811_s25 }
 0x327   : > { %v872_v3 = vrot.slane %v871_v45, 1  ;;  %v864_v14 = vrot.slane %v863_v26, 1  ;;  %p1728_p2 = pnand %p1727_p1, %p1721_p12 }
 0x329   : > { %1366 = vrot.lane.b32.xlu0 %v1360_v49, %s1812_s30  ;;  %v873_v17 = vadd.f32 %v872_v3, %v871_v45  ;;  %v865_v60 = vadd.f32 %v864_v14, %v863_v26 }
 0x32a   : > { %1368 = vrot.lane.b32.xlu1 %v1361_v35, %s1812_s30 }
 0x32b   : > { %v887_v32 = vmul.f32 %v1521_v61, %v873_v17  ;;  %v886_v62 = vmul.f32 %v1520_v1, %v865_v60 }
 0x32d   : > { %1370 = vrot.lane.b32.xlu0 %v1362_v21, %s1812_s30 }
 0x371   : > { %v1117_v12 = vpop.permute.xlu1 %1116 }
 0x372   : > { %v1115_v59 = vpop.permute.xlu0 %1114 }
 0x373   : > { %v1120_v48 = vsel %vm1118_vm5, %v1115_v59, %v1117_v12 }
 0x376   : > { %v1113_v57 = vpop.permute.xlu1 %1112  ;;  %v1058_v13 = vpop.permute.xlu0 %1057 }
 0x377   : > { %v1119_v55 = vsel %vm1118_vm5, %v1113_v57, %v1115_v59 }
 0x37b   : > { %v973_v56 = vpop.permute.xlu1 %972 }
 0x37f   : > { %v1201_v2 = vpop.permute.xlu0 %1200 }
 0x387   : > { %v1286_v31 = vpop.permute.xlu1 %1285 }
 0x38b   : > { %v971_v19 = vpop.permute.xlu0 %970  ;;  %v969_v63 = vpop.permute.xlu1 %968 }
 0x38c   : > { %v976_v29 = vsel %vm974_vm12, %v971_v19, %v973_v56  ;;  %v975_v53 = vsel %vm974_vm12, %v969_v63, %v971_v19 }
 0x38d   : > { %v980_v22 = vadd.f32 %v976_v29, %v887_v32  ;;  %v979_v40 = vadd.f32 %v975_v53, %v886_v62 }
 0x38f   : > { %v1054_v52 = vpop.permute.xlu0 %1053 }
 0x390   : > { %v1056_v6 = vpop.permute.xlu1 %1055 }
 0x391   : > { %v1060_v54 = vsel %vm1059_vm13, %v1054_v52, %v1056_v6  ;;  %v1061_v47 = vsel %vm1059_vm13, %v1056_v6, %v1058_v13 }
 0x392   : > { %v1064_v44 = vadd.f32 %v1060_v54, %v979_v40  ;;  %v1065_v34 = vadd.f32 %v1061_v47, %v980_v22 }
 0x393   : > { %v1197_v58 = vpop.permute.xlu0 %1196 }
 0x394   : > { %v1199_v5 = vpop.permute.xlu1 %1198  ;;  %v1124_v11 = vadd.f32 %v1120_v48, %v1065_v34  ;;  %v1123_v8 = vadd.f32 %v1119_v55, %v1064_v44 }
 0x395   : > { %v1204_v28 = vsel %vm1202_vm6, %v1199_v5, %v1201_v2  ;;  %v1203_v9 = vsel %vm1202_vm6, %v1197_v58, %v1199_v5 }
 0x396   : > { %v1208_v33 = vadd.f32 %v1204_v28, %v1124_v11  ;;  %v1207_v49 = vadd.f32 %v1203_v9, %v1123_v8 }
 0x397   : > { %v1284_v30 = vpop.permute.xlu0 %1283 }
 0x398   : > { %v1282_v10 = vpop.permute.xlu1 %1281  ;;  %v1289_v51 = vsel %vm1287_vm7, %v1284_v30, %v1286_v31 }
 0x399   : > { %v1288_v25 = vsel %vm1287_vm7, %v1282_v10, %v1284_v30  ;;  %v1293_v18 = vadd.f32 %v1289_v51, %v1208_v33 }
 0x39a   : > { %v1292_v35 = vadd.f32 %v1288_v25, %v1207_v49 }
 0x39b   : > { %v1367_v24 = vpop.permute.xlu0 %1366 }
 0x39c   : > { %v1369_v21 = vpop.permute.xlu1 %1368 }
 0x39d   : > { %v1373_v12 = vsel %vm1372_vm9, %v1367_v24, %v1369_v21 }
 0x39e   : > { %v1377_v38 = vadd.f32 %v1373_v12, %v1292_v35 }
 0x39f   : > { %v1371_v59 = vpop.permute.xlu0 %1370 }
 0x3a0   : > { %v1374_v50 = vsel %vm1372_vm9, %v1369_v21, %v1371_v59  ;;  %v1381_v23 = vadd.f32 %v1380_v7, %v1377_v38 }
 0x3a1   : > { %v1378_v57 = vadd.f32 %v1374_v50, %v1293_v18 }
 0x3a2   : > { %v1532_v13 = vmul.f32 -1.442695, %v1381_v23 }
 0x3a3   : > { %v1382_v27 = vadd.f32 %v1380_v7, %v1378_v57 }
 0x3a4   : > { %1684 = vpow2.f32 %v1532_v13 }
 0x3a5   : > { %v1533_v56 = vmul.f32 -1.442695, %v1382_v27 }
 0x3a7   : > { %1686 = vpow2.f32 %v1533_v56 }
 0x3b1   : > { %v1685_v26 = vpop.eup %1684 }
 0x3b2   : > { %v1389_v2 = vadd.f32 1.0, %v1685_v26 }
 0x3b4   : > { %v1687_v45 = vpop.eup %1686  ;;  %1688 = vrcp.f32 %v1389_v2 }
 0x3b5   : > { %v1390_v31 = vadd.f32 1.0, %v1687_v45 }
 0x3b7   : > { %1690 = vrcp.f32 %v1390_v31 }
 0x3c1   : > { %v1689_v16 = vpop.eup %1688 }
 0x3c2   : > { %v1398_v3 = vrot.slane %v1689_v16, %v1986_v15 }
 0x3c4   : > { %v1691_v20 = vpop.eup %1690  ;;  %v1403_v19 = vmul.f32 %v1398_v3, %v2047_v39  ;;  %v1405_v17 = vmul.f32 %v1398_v3, %v2041_v36  ;;  %v1407_v60 = vmul.f32 %v1398_v3, %v2053_v42  ;;  %v1409_v63 = vmul.f32 %v1398_v3, %v2065_v4 }
 0x3c5   : > { %v1402_v14 = vrot.slane %v1691_v20, %v1986_v15 }
 0x3c6   : > { %1411 = vst [vmem:[%s285_s16] sm:$0xff] %v1403_v19  ;;  %1413 = vst [vmem:[%s285_s16 + $0x10] sm:$0xff] %v1405_v17 }
 0x3c7   : > { %v1404_v15 = vmul.f32 %v1402_v14, %v2050_v41  ;;  %v1406_v39 = vmul.f32 %v1402_v14, %v2044_v37  ;;  %v1408_v36 = vmul.f32 %v1402_v14, %v2056_v43  ;;  %v1410_v42 = vmul.f32 %v1402_v14, %v2068_v0  ;;  %1415 = vst [vmem:[%s285_s16 + $0x20] sm:$0xff] %v1407_v60 }
 0x3c8   : > { %1417 = vst [vmem:[%s285_s16 + $0x30] sm:$0xff] %v1409_v63 }
 0x3c9   : > { %1412 = vst [vmem:[%s285_s16 + $0x8] sm:$0xff] %v1404_v15  ;;  %1414 = vst [vmem:[%s285_s16 + $0x18] sm:$0xff] %v1406_v39 }
 0x3ca   : > { %1416 = vst [vmem:[%s285_s16 + $0x28] sm:$0xff] %v1408_v36  ;;  %1418 = vst [vmem:[%s285_s16 + $0x38] sm:$0xff] %v1410_v42 }
 0x3cb   : > { %1731 = shalt.err (!%p1728_p2)
}
 0x3cc   : > { %s1732_s25 = scalar_lea.hbm %s2390_s20, 1024  ;;  %s1736_s10 = scalar_lea.hbm %s2445_s7, 2048 }
 0x3cd   : > { %p1733_p3 = scmp.ne.s32.totalorder %s2390_s20, %s1732_s25  ;;  %p1737_p8 = scmp.lt.s32.totalorder %s2390_s20, %s2445_s7 }
 0x3ce   : > { %p1738_p11 = scmp.lt.s32.totalorder %s1736_s10, %s1732_s25 }
 0x3cf   : > { %p1734_p4 = pnand %p1733_p3, %p1897_p5 }
 0x3d0   : > { %p1739_p9 = por %p1738_p11, %p1737_p8 }
 0x3d1   : > { %p1735_p7 = pneg %p1734_p4 }
 0x3d3   : > { %p1740_p10 = pnand %p1739_p9, %p1735_p7 }
 0x3d5   : > { %1743 = shalt.err (!%p1740_p10)
}
 0x3d6   : > { %s1814_s16 = smov 256   ;;  %s1815_s18 = smov 16  }
 0x3d7   : > { %1545 = dma.vmem_to_hbm [thread:$0]  (%p1897_p5), %s2392_s17, 1024, %s2390_s20, %s2398_s6, %s1814_s16, %s1814_s16, %s1815_s18  }
 0x3d8 PF: > { %p1557_p12 = scmp.ge.s32.totalorder %s1782_s29, 2  ;;  %s1448_s19 = sand.u32 1, %s1770_s26  }
 0x3d9   : > { %s1449_s21 = scalar_lea.sflag [#allocation7], %s1448_s19 }
 0x3da   : > { %p1552_p13 = pnand %p1557_p12, %p1901_p6 }
 0x3dc   : > { %p1553_p0 = pneg %p1552_p13 }
 0x3de   : > { %1765 = dma.done.wait (%p1553_p0), %s1449_s21, 1024  }
 0x3df   : > { %1767 = vsyncadd (%p1553_p0), %s1449_s21, 4294966272  ;;  %p19_p1 = scmp.ge.s32.totalorder %s1884_s8, 4   ;;  %s2456_s26 = smov %s1774_s27 }
 0x3e0   : > { %s2457_s27 = smov %s1778_s28  ;;  %s2458_s28 = smov %s1895_s11 }
 0x3e1   : > { %s2459_s29 = smov %s1884_s8  ;;  %21 = sbr.rel (!%p19_p1) target bundleno = 6 (0x6), region = 90 }
 0x3e6   :  { %1454 = vsyncpa [#allocation6], 1 }
 0x3e7   :  { %1456 = vsyncpa [#allocation6 + $0x1], 1 }
 0x3e8   :  { %1457 = vsyncpa [#allocation7], 1 }
 0x3e9   :  { %1459 = vsyncpa [#allocation7 + $0x1], 1 }

</bundles_post_ra>
